<compile_context>
chip_gen: v6e
topology: v6e:2x2x1
jax: 0.10.0
libtpu: 0.0.40
codegen_flags: <defaults>
</compile_context>

<pallas_src>
import functools

import jax
import jax.numpy as jnp
from jax import lax
from jax.experimental import pallas as pl
from jax.experimental.pallas import tpu as pltpu

FILTERS = 32          # hard-coded in GeneratorV4.__init__
N_RES = 5             # number of ResNetLayer1D blocks
EPS = 1e-5            # nn.InstanceNorm1d default eps (affine=False)
ROWS_TARGET = 2048    # target M = TB*L rows per grid step


# ---------------------------------------------------------------------------
# Kernel
# ---------------------------------------------------------------------------
def generator_v4_kernel(x_ref, w1, w2, w3, wr, wo, bo, out_ref, *,
                        n_res, apply_softmax):
    tb, l, d = x_ref.shape
    m = tb * l

    # Activations kept 2-D (M, C) for MXU-sized matmuls; reshaped to
    # (TB, L, C) only for the per-sample InstanceNorm reductions.
    x = x_ref[...].reshape(m, d)                           # f32 (M, D)

    def mm(h, w):
        # kernel_size=1 Conv1d == per-position channel matmul.  Activations
        # are cast to bf16 only at the MXU input; accumulation stays f32.
        return jnp.dot(h.astype(jnp.bfloat16), w,
                       preferred_element_type=jnp.float32)

    def inorm(h):
        # InstanceNorm1d (affine=False) over the length axis, per sample.
        # Centered (two-pass) variance in f32 for numerical robustness.
        c = h.shape[-1]
        h3 = h.reshape(tb, l, c)
        mu = jnp.mean(h3, axis=1, keepdims=True)
        cen = h3 - mu
        var = jnp.mean(cen * cen, axis=1, keepdims=True)
        return (cen * lax.rsqrt(var + EPS)).reshape(m, c)

    # Stem: 3 x (Conv1d(k=1) -> InstanceNorm1d -> ReLU).  Conv biases that
    # feed an InstanceNorm cancel exactly (IN removes any per-channel
    # constant over L), so b1/b2/b3/br are not passed to the kernel at all.
    h = jax.nn.relu(inorm(mm(x, w1[...])))                 # (M, 32)
    h = jax.nn.relu(inorm(mm(h, w2[...])))                 # (M, 64)
    h = jax.nn.relu(inorm(mm(h, w3[...])))                 # (M, 128)

    # 5 x ResNetLayer1D(128, filter_size=1)
    for i in range(n_res):
        residual = h
        t = jax.nn.relu(inorm(mm(h, wr[i, 0])))
        t = inorm(mm(t, wr[i, 1]))
        h = jax.nn.relu(t + residual)

    # Output projection back to the dictionary size; only this conv's bias
    # survives (no InstanceNorm follows it).
    y = mm(h, wo[...]) + bo[...]                           # (M, D) f32

    if apply_softmax:
        # nn.Softmax(1) over the dictionary axis (lane axis).  D is the true
        # dictionary size (no pad lanes), so no mask is needed; exact divide
        # keeps rows summing to 1.
        y_max = jnp.max(y, axis=-1, keepdims=True)
        e = jnp.exp(y - y_max)                             # EUP
        y = e / jnp.sum(e, axis=-1, keepdims=True)

    out_ref[...] = y.reshape(tb, l, d).astype(out_ref.dtype)


# ---------------------------------------------------------------------------
# Tile / VMEM sizing
# ---------------------------------------------------------------------------
def _vmem_budget_bytes():
    """Generation-aware VMEM budget (v5e/v6e: 128 MiB physical, v7x: 64 MiB)."""
    cap = 128 * 1024 * 1024
    try:
        cap = int(getattr(pltpu.get_tpu_info(), "vmem_capacity_bytes", cap))
    except Exception:
        pass
    # ~70% of physical (leaves headroom for Mosaic internal scratch),
    # capped at 100 MiB, never below the 32 MiB default scoped limit.
    return max(32 * 1024 * 1024, min(100 * 1024 * 1024, (cap * 7) // 10))


def _weight_vmem_bytes(d, n_res=N_RES, f=FILTERS):
    f1, f2, f4 = f, 2 * f, 4 * f
    w = 2 * (d * f1 + f1 * f2 + f2 * f4 + n_res * 2 * f4 * f4 + f4 * d) + 4 * d
    return 2 * w          # the pipeline double-buffers even grid-invariant blocks


def _choose_batch_tile(B, L, D):
    """Largest TB dividing B such that (a) TB*L ~ ROWS_TARGET rows, (b) the
    double-buffered blocks + intermediates fit the generation-aware VMEM
    budget, and (c) the grid keeps >= 4 steps when possible (>= 2 per v7x
    TensorCore so the pipeline actually overlaps)."""
    if B <= 1:
        return 1
    if L % 8 != 0:
        return 1          # keep the in-kernel (TB,L,D)->(TB*L,D) reshape layout-trivial
    budget = _vmem_budget_bytes()
    # Per-row bytes: x block f32 double-buffered (8D) + out block f32
    # double-buffered (8D) + D-wide f32/bf16 intermediates (y, exp, bf16 MXU
    # feed, ~12D) + ~2.5 KB of 128-wide f32 activations (h/residual/t chain).
    per_row = 28 * D + 2560
    rows_vmem = max(8, (budget - _weight_vmem_bytes(D)) // per_row)
    tb = max(1, min(B, ROWS_TARGET // max(L, 1), rows_vmem // max(L, 1)))
    min_steps = min(B, 4)
    tb = min(tb, max(1, B // min_steps))
    while B % tb:
        tb -= 1
    return max(tb, 1)


# ---------------------------------------------------------------------------
# Wrapper
# ---------------------------------------------------------------------------
@functools.partial(jax.jit, static_argnames=("length", "dict_size", "logits"))
def generator_v4_forward(x, params, *, length, dict_size, logits=True):
    """x: any array reshapeable to (-1, length, dict_size); returns (B,1,L,D)."""
    p = params
    n_res = p["wr"].shape[0]

    x3 = x.reshape(-1, length, dict_size).astype(jnp.float32)   # (B, L, D)
    B, L, D = x3.shape

    # Host-side weight prep only: pre-transpose to (Cin, Cout) and cast to
    # bf16 for the MXU.  No dictionary-axis padding and no activation
    # pad/cast passes: x/out move HBM<->VMEM at their true size.
    w1t = p["w1"].T.astype(jnp.bfloat16)                        # (D,  F1)
    w2t = p["w2"].T.astype(jnp.bfloat16)                        # (F1, F2)
    w3t = p["w3"].T.astype(jnp.bfloat16)                        # (F2, F4)
    wrt = jnp.swapaxes(p["wr"], -1, -2).astype(jnp.bfloat16)    # (n_res,2,F4,F4)
    wot = p["wo"].T.astype(jnp.bfloat16)                        # (F4, D)
    bop = p["bo"].astype(jnp.float32)                           # (1,  D)

    TB = _choose_batch_tile(B, L, D)
    grid = (B // TB,)
    vmem_limit = int(_vmem_budget_bytes())

    weight_args = (w1t, w2t, w3t, wrt, wot, bop)

    def full_spec(arr):
        # Grid-invariant (constant index_map): fetched once, not re-DMA'd per
        # step.  For very large dict_size on v7x consider pl.Buffered(1) here
        # plus a dictionary-axis-streamed projection/softmax epilogue.
        return pl.BlockSpec(arr.shape, lambda i, _n=arr.ndim: (0,) * _n)

    kernel = functools.partial(generator_v4_kernel,
                               n_res=n_res,
                               apply_softmax=not logits)

    out = pl.pallas_call(
        kernel,
        out_shape=jax.ShapeDtypeStruct((B, L, D), jnp.float32),
        grid_spec=pltpu.PrefetchScalarGridSpec(
            num_scalar_prefetch=0,
            grid=grid,
            in_specs=[pl.BlockSpec((TB, L, D), lambda i: (i, 0, 0))]
                     + [full_spec(a) for a in weight_args],
            out_specs=pl.BlockSpec((TB, L, D), lambda i: (i, 0, 0)),
        ),
        compiler_params=pltpu.CompilerParams(
            dimension_semantics=("parallel",),
            vmem_limit_bytes=vmem_limit),
    )(x3, *weight_args)

    # matches new_x.transpose(1, 2).view(-1, 1, length, dictionary_size)
    return out.reshape(B, 1, length, dict_size)


# ---------------------------------------------------------------------------
# Parameters & pure-JAX reference (module-exact math, bf16 MXU-input policy)
# ---------------------------------------------------------------------------
def init_params(key, dict_size, filters=FILTERS, n_res=N_RES):
    """Deterministic synthetic parameters with the same shapes as the module."""
    ks = jax.random.split(key, 12)
    f1, f2, f4 = filters, filters * 2, filters * 4

    def w(k, cout, cin):
        return jax.random.normal(k, (cout, cin), jnp.float32) * 0.1

    def b(k, cout):
        return jax.random.normal(k, (1, cout), jnp.float32) * 0.01

    return dict(
        w1=w(ks[0], f1, dict_size), b1=b(ks[1], f1),
        w2=w(ks[2], f2, f1),        b2=b(ks[3], f2),
        w3=w(ks[4], f4, f2),        b3=b(ks[5], f4),
        wr=jax.random.normal(ks[6], (n_res, 2, f4, f4), jnp.float32) * 0.05,
        br=jax.random.normal(ks[7], (n_res, 2, 1, f4), jnp.float32) * 0.01,
        wo=w(ks[8], dict_size, f4), bo=b(ks[9], dict_size),
    )


def _reference_forward(x, params, length, dict_size, logits=True):
    """Pure-JAX reference: original-module math (all biases included), with
    the same bf16-inputs / f32-accumulate matmul policy as the kernel."""
    x3 = x.reshape(-1, length, dict_size).astype(jnp.float32)

    def conv(h, w, b):
        y = jnp.einsum("blc,oc->blo",
                       h.astype(jnp.bfloat16), w.astype(jnp.bfloat16),
                       preferred_element_type=jnp.float32)
        return y + b[None]

    def inorm(h):
        mu = jnp.mean(h, axis=1, keepdims=True)
        var = jnp.mean(jnp.square(h - mu), axis=1, keepdims=True)
        return (h - mu) * lax.rsqrt(var + EPS)

    p = params
    h = jax.nn.relu(inorm(conv(x3, p["w1"], p["b1"])))
    h = jax.nn.relu(inorm(conv(h, p["w2"], p["b2"])))
    h = jax.nn.relu(inorm(conv(h, p["w3"], p["b3"])))
    for i in range(p["wr"].shape[0]):
        r = h
        t = jax.nn.relu(inorm(conv(h, p["wr"][i, 0], p["br"][i, 0])))
        t = inorm(conv(t, p["wr"][i, 1], p["br"][i, 1]))
        h = jax.nn.relu(t + r)
    y = conv(h, p["wo"], p["bo"])
    if not logits:
        y = jax.nn.softmax(y, axis=-1)
    return y.reshape(-1, 1, length, dict_size)


# ---------------------------------------------------------------------------
if __name__ == "__main__":
    key = jax.random.PRNGKey(0)

    def check_logits(out, ref, what):
        assert bool(jnp.all(jnp.isfinite(out))), what
        # Two independently-rounded 13-layer bf16 pipelines with per-layer
        # instance normalization (Pallas MXU vs. XLA einsum) cannot agree
        # bitwise; per-layer bf16 rounding flips amplify through the norms
        # (observed ~1.5% of output scale).  A scale-aware 12% bound still
        # catches any structural bug (wrong axis / dropped layer => O(scale)).
        scale = max(1.0, float(jnp.max(jnp.abs(ref))))
        err = float(jnp.max(jnp.abs(out - ref)))
        assert err < 0.12 * scale, (what, err, scale)

    # Config 1: B=4, L=16, D=16 -> TB=1, grid of 4 steps.
    length, dict_size, batch = 16, 16, 4
    k_x, k_p, key = jax.random.split(key, 3)
    x = jax.random.normal(k_x, (batch, 1, length, dict_size), jnp.float32)
    params = init_params(k_p, dict_size)

    out = jax.block_until_ready(
        generator_v4_forward(x, params, length=length,
                             dict_size=dict_size, logits=True))
    assert out.shape == (batch, 1, length, dict_size), out.shape
    ref = _reference_forward(x, params, length, dict_size, logits=True)
    check_logits(out, ref, "logits")

    # Softmax path (logits=False): exact-normalized in-kernel softmax.
    out_s = jax.block_until_ready(
        generator_v4_forward(x, params, length=length,
                             dict_size=dict_size, logits=False))
    assert bool(jnp.all(jnp.isfinite(out_s)))
    # Tight check of the softmax epilogue against softmax of the kernel's
    # own logits (same trunk computation, so only the epilogue differs).
    probs_from_logits = jax.nn.softmax(out, axis=-1)
    assert float(jnp.max(jnp.abs(out_s - probs_from_logits))) < 2e-2
    # Loose, scale-aware check against the module-exact reference.
    ref_s = _reference_forward(x, params, length, dict_size, logits=False)
    assert float(jnp.max(jnp.abs(out_s - ref_s))) < 1e-1
    assert jnp.allclose(jnp.sum(out_s, axis=-1), 1.0, atol=1e-3)

    # Config 2: different shapes (B=2, L=8, D=16), grid of 2 steps.
    length2, dict2, batch2 = 8, 16, 2
    k_x2, k_p2, key = jax.random.split(key, 3)
    x2 = jax.random.normal(k_x2, (batch2, 1, length2, dict2), jnp.float32)
    params2 = init_params(k_p2, dict2)
    out2 = jax.block_until_ready(
        generator_v4_forward(x2, params2, length=length2,
                             dict_size=dict2, logits=True))
    assert out2.shape == (batch2, 1, length2, dict2), out2.shape
    ref2 = _reference_forward(x2, params2, length2, dict2, logits=True)
    check_logits(out2, ref2, "logits-cfg2")

    print("KERNEL_OK")
</pallas_src>

<mosaic_0001>
module attributes {stable_mosaic.version = 11 : i64} {
  func.func @generator_v4_kernel(%arg0: i32, %arg1: memref<1x16x16xf32, #tpu.memory_space<vmem>>, %arg2: memref<16x32xbf16, #tpu.memory_space<vmem>>, %arg3: memref<32x64xbf16, #tpu.memory_space<vmem>>, %arg4: memref<64x128xbf16, #tpu.memory_space<vmem>>, %arg5: memref<5x2x128x128xbf16, #tpu.memory_space<vmem>>, %arg6: memref<128x16xbf16, #tpu.memory_space<vmem>>, %arg7: memref<1x16xf32, #tpu.memory_space<vmem>>, %arg8: memref<1x16x16xf32, #tpu.memory_space<vmem>>) attributes {dimension_semantics = [#tpu.dimension_semantics<parallel>], iteration_bounds = array<i64: 4>, scalar_prefetch = 0 : i64, scratch_operands = 0 : i64, tpu.core_type = #tpu.core_type<tc>, window_params = [{transform_indices = @transform_0, window_bounds = array<i64: 1, 16, 16>}, {pipeline_mode = #tpu.pipeline_mode<synchronous>, transform_indices = @transform_1, window_bounds = array<i64: 16, 32>}, {pipeline_mode = #tpu.pipeline_mode<synchronous>, transform_indices = @transform_2, window_bounds = array<i64: 32, 64>}, {pipeline_mode = #tpu.pipeline_mode<synchronous>, transform_indices = @transform_3, window_bounds = array<i64: 64, 128>}, {pipeline_mode = #tpu.pipeline_mode<synchronous>, transform_indices = @transform_4, window_bounds = array<i64: 5, 2, 128, 128>}, {pipeline_mode = #tpu.pipeline_mode<synchronous>, transform_indices = @transform_5, window_bounds = array<i64: 128, 16>}, {pipeline_mode = #tpu.pipeline_mode<synchronous>, transform_indices = @transform_6, window_bounds = array<i64: 1, 16>}, {transform_indices = @transform_7, window_bounds = array<i64: 1, 16, 16>}]} {
    %c0 = arith.constant 0 : index
    %c0_0 = arith.constant 0 : index
    %c0_1 = arith.constant 0 : index
    %0 = vector.load %arg1[%c0, %c0_0, %c0_1] : memref<1x16x16xf32, #tpu.memory_space<vmem>>, vector<1x16x16xf32>
    %1 = vector.shape_cast %0 : vector<1x16x16xf32> to vector<16x16xf32>
    %c0_2 = arith.constant 0 : index
    %c0_3 = arith.constant 0 : index
    %2 = vector.load %arg2[%c0_2, %c0_3] : memref<16x32xbf16, #tpu.memory_space<vmem>>, vector<16x32xbf16>
    %3 = arith.truncf %1 : vector<16x16xf32> to vector<16x16xbf16>
    %cst = arith.constant dense<0.000000e+00> : vector<16x32xf32>
    %4 = tpu.matmul %3, %2, %cst {dimension_numbers = #tpu.dot_dimension_numbers<[1], [0], [0], [1], [0, 0, 1, 1], [], []>} : vector<16x16xbf16>, vector<16x32xbf16>, vector<16x32xf32> -> vector<16x32xf32>
    %5 = vector.shape_cast %4 : vector<16x32xf32> to vector<1x16x32xf32>
    %cst_4 = arith.constant dense<0.000000e+00> : vector<1x32xf32>
    %6 = vector.multi_reduction <add>, %5, %cst_4 [1] : vector<1x16x32xf32> to vector<1x32xf32>
    %7 = vector.shape_cast %6 : vector<1x32xf32> to vector<1x1x32xf32>
    %cst_5 = arith.constant 1.600000e+01 : f32
    %8 = vector.broadcast %cst_5 : f32 to vector<1x1x32xf32>
    %9 = arith.divf %7, %8 : vector<1x1x32xf32>
    %10 = vector.broadcast %9 : vector<1x1x32xf32> to vector<1x16x32xf32>
    %11 = arith.subf %5, %10 : vector<1x16x32xf32>
    %12 = arith.mulf %11, %11 : vector<1x16x32xf32>
    %cst_6 = arith.constant dense<0.000000e+00> : vector<1x32xf32>
    %13 = vector.multi_reduction <add>, %12, %cst_6 [1] : vector<1x16x32xf32> to vector<1x32xf32>
    %14 = vector.shape_cast %13 : vector<1x32xf32> to vector<1x1x32xf32>
    %cst_7 = arith.constant 1.600000e+01 : f32
    %15 = vector.broadcast %cst_7 : f32 to vector<1x1x32xf32>
    %16 = arith.divf %14, %15 : vector<1x1x32xf32>
    %cst_8 = arith.constant 9.99999974E-6 : f32
    %17 = vector.broadcast %cst_8 : f32 to vector<1x1x32xf32>
    %18 = arith.addf %16, %17 : vector<1x1x32xf32>
    %19 = math.rsqrt %18 : vector<1x1x32xf32>
    %20 = vector.broadcast %19 : vector<1x1x32xf32> to vector<1x16x32xf32>
    %21 = arith.mulf %11, %20 : vector<1x16x32xf32>
    %22 = vector.shape_cast %21 : vector<1x16x32xf32> to vector<16x32xf32>
    %cst_9 = arith.constant 0.000000e+00 : f32
    %23 = vector.broadcast %cst_9 : f32 to vector<16x32xf32>
    %24 = arith.maximumf %22, %23 : vector<16x32xf32>
    %c0_10 = arith.constant 0 : index
    %c0_11 = arith.constant 0 : index
    %25 = vector.load %arg3[%c0_10, %c0_11] : memref<32x64xbf16, #tpu.memory_space<vmem>>, vector<32x64xbf16>
    %26 = arith.truncf %24 : vector<16x32xf32> to vector<16x32xbf16>
    %cst_12 = arith.constant dense<0.000000e+00> : vector<16x64xf32>
    %27 = tpu.matmul %26, %25, %cst_12 {dimension_numbers = #tpu.dot_dimension_numbers<[1], [0], [0], [1], [0, 0, 1, 1], [], []>} : vector<16x32xbf16>, vector<32x64xbf16>, vector<16x64xf32> -> vector<16x64xf32>
    %28 = vector.shape_cast %27 : vector<16x64xf32> to vector<1x16x64xf32>
    %cst_13 = arith.constant dense<0.000000e+00> : vector<1x64xf32>
    %29 = vector.multi_reduction <add>, %28, %cst_13 [1] : vector<1x16x64xf32> to vector<1x64xf32>
    %30 = vector.shape_cast %29 : vector<1x64xf32> to vector<1x1x64xf32>
    %cst_14 = arith.constant 1.600000e+01 : f32
    %31 = vector.broadcast %cst_14 : f32 to vector<1x1x64xf32>
    %32 = arith.divf %30, %31 : vector<1x1x64xf32>
    %33 = vector.broadcast %32 : vector<1x1x64xf32> to vector<1x16x64xf32>
    %34 = arith.subf %28, %33 : vector<1x16x64xf32>
    %35 = arith.mulf %34, %34 : vector<1x16x64xf32>
    %cst_15 = arith.constant dense<0.000000e+00> : vector<1x64xf32>
    %36 = vector.multi_reduction <add>, %35, %cst_15 [1] : vector<1x16x64xf32> to vector<1x64xf32>
    %37 = vector.shape_cast %36 : vector<1x64xf32> to vector<1x1x64xf32>
    %cst_16 = arith.constant 1.600000e+01 : f32
    %38 = vector.broadcast %cst_16 : f32 to vector<1x1x64xf32>
    %39 = arith.divf %37, %38 : vector<1x1x64xf32>
    %cst_17 = arith.constant 9.99999974E-6 : f32
    %40 = vector.broadcast %cst_17 : f32 to vector<1x1x64xf32>
    %41 = arith.addf %39, %40 : vector<1x1x64xf32>
    %42 = math.rsqrt %41 : vector<1x1x64xf32>
    %43 = vector.broadcast %42 : vector<1x1x64xf32> to vector<1x16x64xf32>
    %44 = arith.mulf %34, %43 : vector<1x16x64xf32>
    %45 = vector.shape_cast %44 : vector<1x16x64xf32> to vector<16x64xf32>
    %cst_18 = arith.constant 0.000000e+00 : f32
    %46 = vector.broadcast %cst_18 : f32 to vector<16x64xf32>
    %47 = arith.maximumf %45, %46 : vector<16x64xf32>
    %c0_19 = arith.constant 0 : index
    %c0_20 = arith.constant 0 : index
    %48 = vector.load %arg4[%c0_19, %c0_20] : memref<64x128xbf16, #tpu.memory_space<vmem>>, vector<64x128xbf16>
    %49 = arith.truncf %47 : vector<16x64xf32> to vector<16x64xbf16>
    %cst_21 = arith.constant dense<0.000000e+00> : vector<16x128xf32>
    %50 = tpu.matmul %49, %48, %cst_21 {dimension_numbers = #tpu.dot_dimension_numbers<[1], [0], [0], [1], [0, 0, 1, 1], [], []>} : vector<16x64xbf16>, vector<64x128xbf16>, vector<16x128xf32> -> vector<16x128xf32>
    %51 = vector.shape_cast %50 : vector<16x128xf32> to vector<1x16x128xf32>
    %cst_22 = arith.constant dense<0.000000e+00> : vector<1x128xf32>
    %52 = vector.multi_reduction <add>, %51, %cst_22 [1] : vector<1x16x128xf32> to vector<1x128xf32>
    %53 = vector.shape_cast %52 : vector<1x128xf32> to vector<1x1x128xf32>
    %cst_23 = arith.constant 1.600000e+01 : f32
    %54 = vector.broadcast %cst_23 : f32 to vector<1x1x128xf32>
    %55 = arith.divf %53, %54 : vector<1x1x128xf32>
    %56 = vector.broadcast %55 : vector<1x1x128xf32> to vector<1x16x128xf32>
    %57 = arith.subf %51, %56 : vector<1x16x128xf32>
    %58 = arith.mulf %57, %57 : vector<1x16x128xf32>
    %cst_24 = arith.constant dense<0.000000e+00> : vector<1x128xf32>
    %59 = vector.multi_reduction <add>, %58, %cst_24 [1] : vector<1x16x128xf32> to vector<1x128xf32>
    %60 = vector.shape_cast %59 : vector<1x128xf32> to vector<1x1x128xf32>
    %cst_25 = arith.constant 1.600000e+01 : f32
    %61 = vector.broadcast %cst_25 : f32 to vector<1x1x128xf32>
    %62 = arith.divf %60, %61 : vector<1x1x128xf32>
    %cst_26 = arith.constant 9.99999974E-6 : f32
    %63 = vector.broadcast %cst_26 : f32 to vector<1x1x128xf32>
    %64 = arith.addf %62, %63 : vector<1x1x128xf32>
    %65 = math.rsqrt %64 : vector<1x1x128xf32>
    %66 = vector.broadcast %65 : vector<1x1x128xf32> to vector<1x16x128xf32>
    %67 = arith.mulf %57, %66 : vector<1x16x128xf32>
    %68 = vector.shape_cast %67 : vector<1x16x128xf32> to vector<16x128xf32>
    %cst_27 = arith.constant 0.000000e+00 : f32
    %69 = vector.broadcast %cst_27 : f32 to vector<16x128xf32>
    %70 = arith.maximumf %68, %69 : vector<16x128xf32>
    %c0_28 = arith.constant 0 : index
    %c0_29 = arith.constant 0 : index
    %c0_30 = arith.constant 0 : index
    %c0_31 = arith.constant 0 : index
    %71 = vector.load %arg5[%c0_28, %c0_29, %c0_30, %c0_31] : memref<5x2x128x128xbf16, #tpu.memory_space<vmem>>, vector<1x1x128x128xbf16>
    %72 = vector.shape_cast %71 : vector<1x1x128x128xbf16> to vector<128x128xbf16>
    %73 = arith.truncf %70 : vector<16x128xf32> to vector<16x128xbf16>
    %cst_32 = arith.constant dense<0.000000e+00> : vector<16x128xf32>
    %74 = tpu.matmul %73, %72, %cst_32 {dimension_numbers = #tpu.dot_dimension_numbers<[1], [0], [0], [1], [0, 0, 1, 1], [], []>} : vector<16x128xbf16>, vector<128x128xbf16>, vector<16x128xf32> -> vector<16x128xf32>
    %75 = vector.shape_cast %74 : vector<16x128xf32> to vector<1x16x128xf32>
    %cst_33 = arith.constant dense<0.000000e+00> : vector<1x128xf32>
    %76 = vector.multi_reduction <add>, %75, %cst_33 [1] : vector<1x16x128xf32> to vector<1x128xf32>
    %77 = vector.shape_cast %76 : vector<1x128xf32> to vector<1x1x128xf32>
    %cst_34 = arith.constant 1.600000e+01 : f32
    %78 = vector.broadcast %cst_34 : f32 to vector<1x1x128xf32>
    %79 = arith.divf %77, %78 : vector<1x1x128xf32>
    %80 = vector.broadcast %79 : vector<1x1x128xf32> to vector<1x16x128xf32>
    %81 = arith.subf %75, %80 : vector<1x16x128xf32>
    %82 = arith.mulf %81, %81 : vector<1x16x128xf32>
    %cst_35 = arith.constant dense<0.000000e+00> : vector<1x128xf32>
    %83 = vector.multi_reduction <add>, %82, %cst_35 [1] : vector<1x16x128xf32> to vector<1x128xf32>
    %84 = vector.shape_cast %83 : vector<1x128xf32> to vector<1x1x128xf32>
    %cst_36 = arith.constant 1.600000e+01 : f32
    %85 = vector.broadcast %cst_36 : f32 to vector<1x1x128xf32>
    %86 = arith.divf %84, %85 : vector<1x1x128xf32>
    %cst_37 = arith.constant 9.99999974E-6 : f32
    %87 = vector.broadcast %cst_37 : f32 to vector<1x1x128xf32>
    %88 = arith.addf %86, %87 : vector<1x1x128xf32>
    %89 = math.rsqrt %88 : vector<1x1x128xf32>
    %90 = vector.broadcast %89 : vector<1x1x128xf32> to vector<1x16x128xf32>
    %91 = arith.mulf %81, %90 : vector<1x16x128xf32>
    %92 = vector.shape_cast %91 : vector<1x16x128xf32> to vector<16x128xf32>
    %cst_38 = arith.constant 0.000000e+00 : f32
    %93 = vector.broadcast %cst_38 : f32 to vector<16x128xf32>
    %94 = arith.maximumf %92, %93 : vector<16x128xf32>
    %c0_39 = arith.constant 0 : index
    %c1 = arith.constant 1 : index
    %c0_40 = arith.constant 0 : index
    %c0_41 = arith.constant 0 : index
    %95 = vector.load %arg5[%c0_39, %c1, %c0_40, %c0_41] : memref<5x2x128x128xbf16, #tpu.memory_space<vmem>>, vector<1x1x128x128xbf16>
    %96 = vector.shape_cast %95 : vector<1x1x128x128xbf16> to vector<128x128xbf16>
    %97 = arith.truncf %94 : vector<16x128xf32> to vector<16x128xbf16>
    %cst_42 = arith.constant dense<0.000000e+00> : vector<16x128xf32>
    %98 = tpu.matmul %97, %96, %cst_42 {dimension_numbers = #tpu.dot_dimension_numbers<[1], [0], [0], [1], [0, 0, 1, 1], [], []>} : vector<16x128xbf16>, vector<128x128xbf16>, vector<16x128xf32> -> vector<16x128xf32>
    %99 = vector.shape_cast %98 : vector<16x128xf32> to vector<1x16x128xf32>
    %cst_43 = arith.constant dense<0.000000e+00> : vector<1x128xf32>
    %100 = vector.multi_reduction <add>, %99, %cst_43 [1] : vector<1x16x128xf32> to vector<1x128xf32>
    %101 = vector.shape_cast %100 : vector<1x128xf32> to vector<1x1x128xf32>
    %cst_44 = arith.constant 1.600000e+01 : f32
    %102 = vector.broadcast %cst_44 : f32 to vector<1x1x128xf32>
    %103 = arith.divf %101, %102 : vector<1x1x128xf32>
    %104 = vector.broadcast %103 : vector<1x1x128xf32> to vector<1x16x128xf32>
    %105 = arith.subf %99, %104 : vector<1x16x128xf32>
    %106 = arith.mulf %105, %105 : vector<1x16x128xf32>
    %cst_45 = arith.constant dense<0.000000e+00> : vector<1x128xf32>
    %107 = vector.multi_reduction <add>, %106, %cst_45 [1] : vector<1x16x128xf32> to vector<1x128xf32>
    %108 = vector.shape_cast %107 : vector<1x128xf32> to vector<1x1x128xf32>
    %cst_46 = arith.constant 1.600000e+01 : f32
    %109 = vector.broadcast %cst_46 : f32 to vector<1x1x128xf32>
    %110 = arith.divf %108, %109 : vector<1x1x128xf32>
    %cst_47 = arith.constant 9.99999974E-6 : f32
    %111 = vector.broadcast %cst_47 : f32 to vector<1x1x128xf32>
    %112 = arith.addf %110, %111 : vector<1x1x128xf32>
    %113 = math.rsqrt %112 : vector<1x1x128xf32>
    %114 = vector.broadcast %113 : vector<1x1x128xf32> to vector<1x16x128xf32>
    %115 = arith.mulf %105, %114 : vector<1x16x128xf32>
    %116 = vector.shape_cast %115 : vector<1x16x128xf32> to vector<16x128xf32>
    %117 = arith.addf %116, %70 : vector<16x128xf32>
    %cst_48 = arith.constant 0.000000e+00 : f32
    %118 = vector.broadcast %cst_48 : f32 to vector<16x128xf32>
    %119 = arith.maximumf %117, %118 : vector<16x128xf32>
    %c1_49 = arith.constant 1 : index
    %c0_50 = arith.constant 0 : index
    %c0_51 = arith.constant 0 : index
    %c0_52 = arith.constant 0 : index
    %120 = vector.load %arg5[%c1_49, %c0_50, %c0_51, %c0_52] : memref<5x2x128x128xbf16, #tpu.memory_space<vmem>>, vector<1x1x128x128xbf16>
    %121 = vector.shape_cast %120 : vector<1x1x128x128xbf16> to vector<128x128xbf16>
    %122 = arith.truncf %119 : vector<16x128xf32> to vector<16x128xbf16>
    %cst_53 = arith.constant dense<0.000000e+00> : vector<16x128xf32>
    %123 = tpu.matmul %122, %121, %cst_53 {dimension_numbers = #tpu.dot_dimension_numbers<[1], [0], [0], [1], [0, 0, 1, 1], [], []>} : vector<16x128xbf16>, vector<128x128xbf16>, vector<16x128xf32> -> vector<16x128xf32>
    %124 = vector.shape_cast %123 : vector<16x128xf32> to vector<1x16x128xf32>
    %cst_54 = arith.constant dense<0.000000e+00> : vector<1x128xf32>
    %125 = vector.multi_reduction <add>, %124, %cst_54 [1] : vector<1x16x128xf32> to vector<1x128xf32>
    %126 = vector.shape_cast %125 : vector<1x128xf32> to vector<1x1x128xf32>
    %cst_55 = arith.constant 1.600000e+01 : f32
    %127 = vector.broadcast %cst_55 : f32 to vector<1x1x128xf32>
    %128 = arith.divf %126, %127 : vector<1x1x128xf32>
    %129 = vector.broadcast %128 : vector<1x1x128xf32> to vector<1x16x128xf32>
    %130 = arith.subf %124, %129 : vector<1x16x128xf32>
    %131 = arith.mulf %130, %130 : vector<1x16x128xf32>
    %cst_56 = arith.constant dense<0.000000e+00> : vector<1x128xf32>
    %132 = vector.multi_reduction <add>, %131, %cst_56 [1] : vector<1x16x128xf32> to vector<1x128xf32>
    %133 = vector.shape_cast %132 : vector<1x128xf32> to vector<1x1x128xf32>
    %cst_57 = arith.constant 1.600000e+01 : f32
    %134 = vector.broadcast %cst_57 : f32 to vector<1x1x128xf32>
    %135 = arith.divf %133, %134 : vector<1x1x128xf32>
    %cst_58 = arith.constant 9.99999974E-6 : f32
    %136 = vector.broadcast %cst_58 : f32 to vector<1x1x128xf32>
    %137 = arith.addf %135, %136 : vector<1x1x128xf32>
    %138 = math.rsqrt %137 : vector<1x1x128xf32>
    %139 = vector.broadcast %138 : vector<1x1x128xf32> to vector<1x16x128xf32>
    %140 = arith.mulf %130, %139 : vector<1x16x128xf32>
    %141 = vector.shape_cast %140 : vector<1x16x128xf32> to vector<16x128xf32>
    %cst_59 = arith.constant 0.000000e+00 : f32
    %142 = vector.broadcast %cst_59 : f32 to vector<16x128xf32>
    %143 = arith.maximumf %141, %142 : vector<16x128xf32>
    %c1_60 = arith.constant 1 : index
    %c1_61 = arith.constant 1 : index
    %c0_62 = arith.constant 0 : index
    %c0_63 = arith.constant 0 : index
    %144 = vector.load %arg5[%c1_60, %c1_61, %c0_62, %c0_63] : memref<5x2x128x128xbf16, #tpu.memory_space<vmem>>, vector<1x1x128x128xbf16>
    %145 = vector.shape_cast %144 : vector<1x1x128x128xbf16> to vector<128x128xbf16>
    %146 = arith.truncf %143 : vector<16x128xf32> to vector<16x128xbf16>
    %cst_64 = arith.constant dense<0.000000e+00> : vector<16x128xf32>
    %147 = tpu.matmul %146, %145, %cst_64 {dimension_numbers = #tpu.dot_dimension_numbers<[1], [0], [0], [1], [0, 0, 1, 1], [], []>} : vector<16x128xbf16>, vector<128x128xbf16>, vector<16x128xf32> -> vector<16x128xf32>
    %148 = vector.shape_cast %147 : vector<16x128xf32> to vector<1x16x128xf32>
    %cst_65 = arith.constant dense<0.000000e+00> : vector<1x128xf32>
    %149 = vector.multi_reduction <add>, %148, %cst_65 [1] : vector<1x16x128xf32> to vector<1x128xf32>
    %150 = vector.shape_cast %149 : vector<1x128xf32> to vector<1x1x128xf32>
    %cst_66 = arith.constant 1.600000e+01 : f32
    %151 = vector.broadcast %cst_66 : f32 to vector<1x1x128xf32>
    %152 = arith.divf %150, %151 : vector<1x1x128xf32>
    %153 = vector.broadcast %152 : vector<1x1x128xf32> to vector<1x16x128xf32>
    %154 = arith.subf %148, %153 : vector<1x16x128xf32>
    %155 = arith.mulf %154, %154 : vector<1x16x128xf32>
    %cst_67 = arith.constant dense<0.000000e+00> : vector<1x128xf32>
    %156 = vector.multi_reduction <add>, %155, %cst_67 [1] : vector<1x16x128xf32> to vector<1x128xf32>
    %157 = vector.shape_cast %156 : vector<1x128xf32> to vector<1x1x128xf32>
    %cst_68 = arith.constant 1.600000e+01 : f32
    %158 = vector.broadcast %cst_68 : f32 to vector<1x1x128xf32>
    %159 = arith.divf %157, %158 : vector<1x1x128xf32>
    %cst_69 = arith.constant 9.99999974E-6 : f32
    %160 = vector.broadcast %cst_69 : f32 to vector<1x1x128xf32>
    %161 = arith.addf %159, %160 : vector<1x1x128xf32>
    %162 = math.rsqrt %161 : vector<1x1x128xf32>
    %163 = vector.broadcast %162 : vector<1x1x128xf32> to vector<1x16x128xf32>
    %164 = arith.mulf %154, %163 : vector<1x16x128xf32>
    %165 = vector.shape_cast %164 : vector<1x16x128xf32> to vector<16x128xf32>
    %166 = arith.addf %165, %119 : vector<16x128xf32>
    %cst_70 = arith.constant 0.000000e+00 : f32
    %167 = vector.broadcast %cst_70 : f32 to vector<16x128xf32>
    %168 = arith.maximumf %166, %167 : vector<16x128xf32>
    %c2 = arith.constant 2 : index
    %c0_71 = arith.constant 0 : index
    %c0_72 = arith.constant 0 : index
    %c0_73 = arith.constant 0 : index
    %169 = vector.load %arg5[%c2, %c0_71, %c0_72, %c0_73] : memref<5x2x128x128xbf16, #tpu.memory_space<vmem>>, vector<1x1x128x128xbf16>
    %170 = vector.shape_cast %169 : vector<1x1x128x128xbf16> to vector<128x128xbf16>
    %171 = arith.truncf %168 : vector<16x128xf32> to vector<16x128xbf16>
    %cst_74 = arith.constant dense<0.000000e+00> : vector<16x128xf32>
    %172 = tpu.matmul %171, %170, %cst_74 {dimension_numbers = #tpu.dot_dimension_numbers<[1], [0], [0], [1], [0, 0, 1, 1], [], []>} : vector<16x128xbf16>, vector<128x128xbf16>, vector<16x128xf32> -> vector<16x128xf32>
    %173 = vector.shape_cast %172 : vector<16x128xf32> to vector<1x16x128xf32>
    %cst_75 = arith.constant dense<0.000000e+00> : vector<1x128xf32>
    %174 = vector.multi_reduction <add>, %173, %cst_75 [1] : vector<1x16x128xf32> to vector<1x128xf32>
    %175 = vector.shape_cast %174 : vector<1x128xf32> to vector<1x1x128xf32>
    %cst_76 = arith.constant 1.600000e+01 : f32
    %176 = vector.broadcast %cst_76 : f32 to vector<1x1x128xf32>
    %177 = arith.divf %175, %176 : vector<1x1x128xf32>
    %178 = vector.broadcast %177 : vector<1x1x128xf32> to vector<1x16x128xf32>
    %179 = arith.subf %173, %178 : vector<1x16x128xf32>
    %180 = arith.mulf %179, %179 : vector<1x16x128xf32>
    %cst_77 = arith.constant dense<0.000000e+00> : vector<1x128xf32>
    %181 = vector.multi_reduction <add>, %180, %cst_77 [1] : vector<1x16x128xf32> to vector<1x128xf32>
    %182 = vector.shape_cast %181 : vector<1x128xf32> to vector<1x1x128xf32>
    %cst_78 = arith.constant 1.600000e+01 : f32
    %183 = vector.broadcast %cst_78 : f32 to vector<1x1x128xf32>
    %184 = arith.divf %182, %183 : vector<1x1x128xf32>
    %cst_79 = arith.constant 9.99999974E-6 : f32
    %185 = vector.broadcast %cst_79 : f32 to vector<1x1x128xf32>
    %186 = arith.addf %184, %185 : vector<1x1x128xf32>
    %187 = math.rsqrt %186 : vector<1x1x128xf32>
    %188 = vector.broadcast %187 : vector<1x1x128xf32> to vector<1x16x128xf32>
    %189 = arith.mulf %179, %188 : vector<1x16x128xf32>
    %190 = vector.shape_cast %189 : vector<1x16x128xf32> to vector<16x128xf32>
    %cst_80 = arith.constant 0.000000e+00 : f32
    %191 = vector.broadcast %cst_80 : f32 to vector<16x128xf32>
    %192 = arith.maximumf %190, %191 : vector<16x128xf32>
    %c2_81 = arith.constant 2 : index
    %c1_82 = arith.constant 1 : index
    %c0_83 = arith.constant 0 : index
    %c0_84 = arith.constant 0 : index
    %193 = vector.load %arg5[%c2_81, %c1_82, %c0_83, %c0_84] : memref<5x2x128x128xbf16, #tpu.memory_space<vmem>>, vector<1x1x128x128xbf16>
    %194 = vector.shape_cast %193 : vector<1x1x128x128xbf16> to vector<128x128xbf16>
    %195 = arith.truncf %192 : vector<16x128xf32> to vector<16x128xbf16>
    %cst_85 = arith.constant dense<0.000000e+00> : vector<16x128xf32>
    %196 = tpu.matmul %195, %194, %cst_85 {dimension_numbers = #tpu.dot_dimension_numbers<[1], [0], [0], [1], [0, 0, 1, 1], [], []>} : vector<16x128xbf16>, vector<128x128xbf16>, vector<16x128xf32> -> vector<16x128xf32>
    %197 = vector.shape_cast %196 : vector<16x128xf32> to vector<1x16x128xf32>
    %cst_86 = arith.constant dense<0.000000e+00> : vector<1x128xf32>
    %198 = vector.multi_reduction <add>, %197, %cst_86 [1] : vector<1x16x128xf32> to vector<1x128xf32>
    %199 = vector.shape_cast %198 : vector<1x128xf32> to vector<1x1x128xf32>
    %cst_87 = arith.constant 1.600000e+01 : f32
    %200 = vector.broadcast %cst_87 : f32 to vector<1x1x128xf32>
    %201 = arith.divf %199, %200 : vector<1x1x128xf32>
    %202 = vector.broadcast %201 : vector<1x1x128xf32> to vector<1x16x128xf32>
    %203 = arith.subf %197, %202 : vector<1x16x128xf32>
    %204 = arith.mulf %203, %203 : vector<1x16x128xf32>
    %cst_88 = arith.constant dense<0.000000e+00> : vector<1x128xf32>
    %205 = vector.multi_reduction <add>, %204, %cst_88 [1] : vector<1x16x128xf32> to vector<1x128xf32>
    %206 = vector.shape_cast %205 : vector<1x128xf32> to vector<1x1x128xf32>
    %cst_89 = arith.constant 1.600000e+01 : f32
    %207 = vector.broadcast %cst_89 : f32 to vector<1x1x128xf32>
    %208 = arith.divf %206, %207 : vector<1x1x128xf32>
    %cst_90 = arith.constant 9.99999974E-6 : f32
    %209 = vector.broadcast %cst_90 : f32 to vector<1x1x128xf32>
    %210 = arith.addf %208, %209 : vector<1x1x128xf32>
    %211 = math.rsqrt %210 : vector<1x1x128xf32>
    %212 = vector.broadcast %211 : vector<1x1x128xf32> to vector<1x16x128xf32>
    %213 = arith.mulf %203, %212 : vector<1x16x128xf32>
    %214 = vector.shape_cast %213 : vector<1x16x128xf32> to vector<16x128xf32>
    %215 = arith.addf %214, %168 : vector<16x128xf32>
    %cst_91 = arith.constant 0.000000e+00 : f32
    %216 = vector.broadcast %cst_91 : f32 to vector<16x128xf32>
    %217 = arith.maximumf %215, %216 : vector<16x128xf32>
    %c3 = arith.constant 3 : index
    %c0_92 = arith.constant 0 : index
    %c0_93 = arith.constant 0 : index
    %c0_94 = arith.constant 0 : index
    %218 = vector.load %arg5[%c3, %c0_92, %c0_93, %c0_94] : memref<5x2x128x128xbf16, #tpu.memory_space<vmem>>, vector<1x1x128x128xbf16>
    %219 = vector.shape_cast %218 : vector<1x1x128x128xbf16> to vector<128x128xbf16>
    %220 = arith.truncf %217 : vector<16x128xf32> to vector<16x128xbf16>
    %cst_95 = arith.constant dense<0.000000e+00> : vector<16x128xf32>
    %221 = tpu.matmul %220, %219, %cst_95 {dimension_numbers = #tpu.dot_dimension_numbers<[1], [0], [0], [1], [0, 0, 1, 1], [], []>} : vector<16x128xbf16>, vector<128x128xbf16>, vector<16x128xf32> -> vector<16x128xf32>
    %222 = vector.shape_cast %221 : vector<16x128xf32> to vector<1x16x128xf32>
    %cst_96 = arith.constant dense<0.000000e+00> : vector<1x128xf32>
    %223 = vector.multi_reduction <add>, %222, %cst_96 [1] : vector<1x16x128xf32> to vector<1x128xf32>
    %224 = vector.shape_cast %223 : vector<1x128xf32> to vector<1x1x128xf32>
    %cst_97 = arith.constant 1.600000e+01 : f32
    %225 = vector.broadcast %cst_97 : f32 to vector<1x1x128xf32>
    %226 = arith.divf %224, %225 : vector<1x1x128xf32>
    %227 = vector.broadcast %226 : vector<1x1x128xf32> to vector<1x16x128xf32>
    %228 = arith.subf %222, %227 : vector<1x16x128xf32>
    %229 = arith.mulf %228, %228 : vector<1x16x128xf32>
    %cst_98 = arith.constant dense<0.000000e+00> : vector<1x128xf32>
    %230 = vector.multi_reduction <add>, %229, %cst_98 [1] : vector<1x16x128xf32> to vector<1x128xf32>
    %231 = vector.shape_cast %230 : vector<1x128xf32> to vector<1x1x128xf32>
    %cst_99 = arith.constant 1.600000e+01 : f32
    %232 = vector.broadcast %cst_99 : f32 to vector<1x1x128xf32>
    %233 = arith.divf %231, %232 : vector<1x1x128xf32>
    %cst_100 = arith.constant 9.99999974E-6 : f32
    %234 = vector.broadcast %cst_100 : f32 to vector<1x1x128xf32>
    %235 = arith.addf %233, %234 : vector<1x1x128xf32>
    %236 = math.rsqrt %235 : vector<1x1x128xf32>
    %237 = vector.broadcast %236 : vector<1x1x128xf32> to vector<1x16x128xf32>
    %238 = arith.mulf %228, %237 : vector<1x16x128xf32>
    %239 = vector.shape_cast %238 : vector<1x16x128xf32> to vector<16x128xf32>
    %cst_101 = arith.constant 0.000000e+00 : f32
    %240 = vector.broadcast %cst_101 : f32 to vector<16x128xf32>
    %241 = arith.maximumf %239, %240 : vector<16x128xf32>
    %c3_102 = arith.constant 3 : index
    %c1_103 = arith.constant 1 : index
    %c0_104 = arith.constant 0 : index
    %c0_105 = arith.constant 0 : index
    %242 = vector.load %arg5[%c3_102, %c1_103, %c0_104, %c0_105] : memref<5x2x128x128xbf16, #tpu.memory_space<vmem>>, vector<1x1x128x128xbf16>
    %243 = vector.shape_cast %242 : vector<1x1x128x128xbf16> to vector<128x128xbf16>
    %244 = arith.truncf %241 : vector<16x128xf32> to vector<16x128xbf16>
    %cst_106 = arith.constant dense<0.000000e+00> : vector<16x128xf32>
    %245 = tpu.matmul %244, %243, %cst_106 {dimension_numbers = #tpu.dot_dimension_numbers<[1], [0], [0], [1], [0, 0, 1, 1], [], []>} : vector<16x128xbf16>, vector<128x128xbf16>, vector<16x128xf32> -> vector<16x128xf32>
    %246 = vector.shape_cast %245 : vector<16x128xf32> to vector<1x16x128xf32>
    %cst_107 = arith.constant dense<0.000000e+00> : vector<1x128xf32>
    %247 = vector.multi_reduction <add>, %246, %cst_107 [1] : vector<1x16x128xf32> to vector<1x128xf32>
    %248 = vector.shape_cast %247 : vector<1x128xf32> to vector<1x1x128xf32>
    %cst_108 = arith.constant 1.600000e+01 : f32
    %249 = vector.broadcast %cst_108 : f32 to vector<1x1x128xf32>
    %250 = arith.divf %248, %249 : vector<1x1x128xf32>
    %251 = vector.broadcast %250 : vector<1x1x128xf32> to vector<1x16x128xf32>
    %252 = arith.subf %246, %251 : vector<1x16x128xf32>
    %253 = arith.mulf %252, %252 : vector<1x16x128xf32>
    %cst_109 = arith.constant dense<0.000000e+00> : vector<1x128xf32>
    %254 = vector.multi_reduction <add>, %253, %cst_109 [1] : vector<1x16x128xf32> to vector<1x128xf32>
    %255 = vector.shape_cast %254 : vector<1x128xf32> to vector<1x1x128xf32>
    %cst_110 = arith.constant 1.600000e+01 : f32
    %256 = vector.broadcast %cst_110 : f32 to vector<1x1x128xf32>
    %257 = arith.divf %255, %256 : vector<1x1x128xf32>
    %cst_111 = arith.constant 9.99999974E-6 : f32
    %258 = vector.broadcast %cst_111 : f32 to vector<1x1x128xf32>
    %259 = arith.addf %257, %258 : vector<1x1x128xf32>
    %260 = math.rsqrt %259 : vector<1x1x128xf32>
    %261 = vector.broadcast %260 : vector<1x1x128xf32> to vector<1x16x128xf32>
    %262 = arith.mulf %252, %261 : vector<1x16x128xf32>
    %263 = vector.shape_cast %262 : vector<1x16x128xf32> to vector<16x128xf32>
    %264 = arith.addf %263, %217 : vector<16x128xf32>
    %cst_112 = arith.constant 0.000000e+00 : f32
    %265 = vector.broadcast %cst_112 : f32 to vector<16x128xf32>
    %266 = arith.maximumf %264, %265 : vector<16x128xf32>
    %c4 = arith.constant 4 : index
    %c0_113 = arith.constant 0 : index
    %c0_114 = arith.constant 0 : index
    %c0_115 = arith.constant 0 : index
    %267 = vector.load %arg5[%c4, %c0_113, %c0_114, %c0_115] : memref<5x2x128x128xbf16, #tpu.memory_space<vmem>>, vector<1x1x128x128xbf16>
    %268 = vector.shape_cast %267 : vector<1x1x128x128xbf16> to vector<128x128xbf16>
    %269 = arith.truncf %266 : vector<16x128xf32> to vector<16x128xbf16>
    %cst_116 = arith.constant dense<0.000000e+00> : vector<16x128xf32>
    %270 = tpu.matmul %269, %268, %cst_116 {dimension_numbers = #tpu.dot_dimension_numbers<[1], [0], [0], [1], [0, 0, 1, 1], [], []>} : vector<16x128xbf16>, vector<128x128xbf16>, vector<16x128xf32> -> vector<16x128xf32>
    %271 = vector.shape_cast %270 : vector<16x128xf32> to vector<1x16x128xf32>
    %cst_117 = arith.constant dense<0.000000e+00> : vector<1x128xf32>
    %272 = vector.multi_reduction <add>, %271, %cst_117 [1] : vector<1x16x128xf32> to vector<1x128xf32>
    %273 = vector.shape_cast %272 : vector<1x128xf32> to vector<1x1x128xf32>
    %cst_118 = arith.constant 1.600000e+01 : f32
    %274 = vector.broadcast %cst_118 : f32 to vector<1x1x128xf32>
    %275 = arith.divf %273, %274 : vector<1x1x128xf32>
    %276 = vector.broadcast %275 : vector<1x1x128xf32> to vector<1x16x128xf32>
    %277 = arith.subf %271, %276 : vector<1x16x128xf32>
    %278 = arith.mulf %277, %277 : vector<1x16x128xf32>
    %cst_119 = arith.constant dense<0.000000e+00> : vector<1x128xf32>
    %279 = vector.multi_reduction <add>, %278, %cst_119 [1] : vector<1x16x128xf32> to vector<1x128xf32>
    %280 = vector.shape_cast %279 : vector<1x128xf32> to vector<1x1x128xf32>
    %cst_120 = arith.constant 1.600000e+01 : f32
    %281 = vector.broadcast %cst_120 : f32 to vector<1x1x128xf32>
    %282 = arith.divf %280, %281 : vector<1x1x128xf32>
    %cst_121 = arith.constant 9.99999974E-6 : f32
    %283 = vector.broadcast %cst_121 : f32 to vector<1x1x128xf32>
    %284 = arith.addf %282, %283 : vector<1x1x128xf32>
    %285 = math.rsqrt %284 : vector<1x1x128xf32>
    %286 = vector.broadcast %285 : vector<1x1x128xf32> to vector<1x16x128xf32>
    %287 = arith.mulf %277, %286 : vector<1x16x128xf32>
    %288 = vector.shape_cast %287 : vector<1x16x128xf32> to vector<16x128xf32>
    %cst_122 = arith.constant 0.000000e+00 : f32
    %289 = vector.broadcast %cst_122 : f32 to vector<16x128xf32>
    %290 = arith.maximumf %288, %289 : vector<16x128xf32>
    %c4_123 = arith.constant 4 : index
    %c1_124 = arith.constant 1 : index
    %c0_125 = arith.constant 0 : index
    %c0_126 = arith.constant 0 : index
    %291 = vector.load %arg5[%c4_123, %c1_124, %c0_125, %c0_126] : memref<5x2x128x128xbf16, #tpu.memory_space<vmem>>, vector<1x1x128x128xbf16>
    %292 = vector.shape_cast %291 : vector<1x1x128x128xbf16> to vector<128x128xbf16>
    %293 = arith.truncf %290 : vector<16x128xf32> to vector<16x128xbf16>
    %cst_127 = arith.constant dense<0.000000e+00> : vector<16x128xf32>
    %294 = tpu.matmul %293, %292, %cst_127 {dimension_numbers = #tpu.dot_dimension_numbers<[1], [0], [0], [1], [0, 0, 1, 1], [], []>} : vector<16x128xbf16>, vector<128x128xbf16>, vector<16x128xf32> -> vector<16x128xf32>
    %295 = vector.shape_cast %294 : vector<16x128xf32> to vector<1x16x128xf32>
    %cst_128 = arith.constant dense<0.000000e+00> : vector<1x128xf32>
    %296 = vector.multi_reduction <add>, %295, %cst_128 [1] : vector<1x16x128xf32> to vector<1x128xf32>
    %297 = vector.shape_cast %296 : vector<1x128xf32> to vector<1x1x128xf32>
    %cst_129 = arith.constant 1.600000e+01 : f32
    %298 = vector.broadcast %cst_129 : f32 to vector<1x1x128xf32>
    %299 = arith.divf %297, %298 : vector<1x1x128xf32>
    %300 = vector.broadcast %299 : vector<1x1x128xf32> to vector<1x16x128xf32>
    %301 = arith.subf %295, %300 : vector<1x16x128xf32>
    %302 = arith.mulf %301, %301 : vector<1x16x128xf32>
    %cst_130 = arith.constant dense<0.000000e+00> : vector<1x128xf32>
    %303 = vector.multi_reduction <add>, %302, %cst_130 [1] : vector<1x16x128xf32> to vector<1x128xf32>
    %304 = vector.shape_cast %303 : vector<1x128xf32> to vector<1x1x128xf32>
    %cst_131 = arith.constant 1.600000e+01 : f32
    %305 = vector.broadcast %cst_131 : f32 to vector<1x1x128xf32>
    %306 = arith.divf %304, %305 : vector<1x1x128xf32>
    %cst_132 = arith.constant 9.99999974E-6 : f32
    %307 = vector.broadcast %cst_132 : f32 to vector<1x1x128xf32>
    %308 = arith.addf %306, %307 : vector<1x1x128xf32>
    %309 = math.rsqrt %308 : vector<1x1x128xf32>
    %310 = vector.broadcast %309 : vector<1x1x128xf32> to vector<1x16x128xf32>
    %311 = arith.mulf %301, %310 : vector<1x16x128xf32>
    %312 = vector.shape_cast %311 : vector<1x16x128xf32> to vector<16x128xf32>
    %313 = arith.addf %312, %266 : vector<16x128xf32>
    %cst_133 = arith.constant 0.000000e+00 : f32
    %314 = vector.broadcast %cst_133 : f32 to vector<16x128xf32>
    %315 = arith.maximumf %313, %314 : vector<16x128xf32>
    %c0_134 = arith.constant 0 : index
    %c0_135 = arith.constant 0 : index
    %316 = vector.load %arg6[%c0_134, %c0_135] : memref<128x16xbf16, #tpu.memory_space<vmem>>, vector<128x16xbf16>
    %317 = arith.truncf %315 : vector<16x128xf32> to vector<16x128xbf16>
    %cst_136 = arith.constant dense<0.000000e+00> : vector<16x16xf32>
    %318 = tpu.matmul %317, %316, %cst_136 {dimension_numbers = #tpu.dot_dimension_numbers<[1], [0], [0], [1], [0, 0, 1, 1], [], []>} : vector<16x128xbf16>, vector<128x16xbf16>, vector<16x16xf32> -> vector<16x16xf32>
    %c0_137 = arith.constant 0 : index
    %c0_138 = arith.constant 0 : index
    %319 = vector.load %arg7[%c0_137, %c0_138] : memref<1x16xf32, #tpu.memory_space<vmem>>, vector<1x16xf32>
    %320 = vector.broadcast %319 : vector<1x16xf32> to vector<16x16xf32>
    %321 = arith.addf %318, %320 : vector<16x16xf32>
    %322 = vector.shape_cast %321 : vector<16x16xf32> to vector<1x16x16xf32>
    %c0_139 = arith.constant 0 : index
    %c0_140 = arith.constant 0 : index
    %c0_141 = arith.constant 0 : index
    %323 = vector.load %arg8[%c0_139, %c0_140, %c0_141] : memref<1x16x16xf32, #tpu.memory_space<vmem>>, vector<1x16x16xf32>
    tpu.vector_store %arg8[%c0_139, %c0_140, %c0_141], %322 {strides = array<i32>} : memref<1x16x16xf32, #tpu.memory_space<vmem>>, vector<1x16x16xf32>,
    return
  }
  func.func @transform_0(%arg0: i32) -> (i32, i32, i32) {
    %c0_i32 = arith.constant 0 : i32
    %c0_i32_0 = arith.constant 0 : i32
    %c0_i32_1 = arith.constant 0 : i32
    return %arg0, %c0_i32, %c0_i32_0 : i32, i32, i32
  }
  func.func @transform_1(%arg0: i32) -> (i32, i32) {
    %c0_i32 = arith.constant 0 : i32
    %c0_i32_0 = arith.constant 0 : i32
    %c0_i32_1 = arith.constant 0 : i32
    return %c0_i32, %c0_i32_0 : i32, i32
  }
  func.func @transform_2(%arg0: i32) -> (i32, i32) {
    %c0_i32 = arith.constant 0 : i32
    %c0_i32_0 = arith.constant 0 : i32
    %c0_i32_1 = arith.constant 0 : i32
    return %c0_i32, %c0_i32_0 : i32, i32
  }
  func.func @transform_3(%arg0: i32) -> (i32, i32) {
    %c0_i32 = arith.constant 0 : i32
    %c0_i32_0 = arith.constant 0 : i32
    %c0_i32_1 = arith.constant 0 : i32
    return %c0_i32, %c0_i32_0 : i32, i32
  }
  func.func @transform_4(%arg0: i32) -> (i32, i32, i32, i32) {
    %c0_i32 = arith.constant 0 : i32
    %c0_i32_0 = arith.constant 0 : i32
    %c0_i32_1 = arith.constant 0 : i32
    %c0_i32_2 = arith.constant 0 : i32
    %c0_i32_3 = arith.constant 0 : i32
    return %c0_i32, %c0_i32_0, %c0_i32_1, %c0_i32_2 : i32, i32, i32, i32
  }
  func.func @transform_5(%arg0: i32) -> (i32, i32) {
    %c0_i32 = arith.constant 0 : i32
    %c0_i32_0 = arith.constant 0 : i32
    %c0_i32_1 = arith.constant 0 : i32
    return %c0_i32, %c0_i32_0 : i32, i32
  }
  func.func @transform_6(%arg0: i32) -> (i32, i32) {
    %c0_i32 = arith.constant 0 : i32
    %c0_i32_0 = arith.constant 0 : i32
    %c0_i32_1 = arith.constant 0 : i32
    return %c0_i32, %c0_i32_0 : i32, i32
  }
  func.func @transform_7(%arg0: i32) -> (i32, i32, i32) {
    %c0_i32 = arith.constant 0 : i32
    %c0_i32_0 = arith.constant 0 : i32
    %c0_i32_1 = arith.constant 0 : i32
    return %arg0, %c0_i32, %c0_i32_0 : i32, i32, i32
  }
}

</mosaic_0001>

<bundles_post_ra>
// kernel: generator_v4_forward.1
= control target key start
LH: loop header
LB: loop body
LE: loop exit
PB: predicated region body
PF: predicated region fallthrough
CT: control target
= control target key end

     0   :  { %12 = vsyncpa [#allocation3], 0  ;;  %s3570_s0 = inlined_call_operand.vmem [shape: f32[4,16,16], index: 0, kind: input, shape index: {}]   ;;  %s3571_s1 = inlined_call_operand.vmem [shape: bf16[16,32], index: 1, kind: input, shape index: {}]   ;;  %s3572_s2 = inlined_call_operand.vmem [shape: bf16[32,64], index: 2, kind: input, shape index: {}]   ;;  %s3573_s3 = inlined_call_operand.vmem [shape: bf16[64,128], index: 3, kind: input, shape index: {}]   ;;  %s3574_s4 = inlined_call_operand.vmem [shape: bf16[5,2,128,128], index: 4, kind: input, shape index: {}]   ;;  %s3575_s5 = inlined_call_operand.vmem [shape: bf16[128,16], index: 5, kind: input, shape index: {}]   ;;  %s3576_s6 = inlined_call_operand.vmem [shape: f32[1,16], index: 6, kind: input, shape index: {}]   ;;  %s3577_s7 = inlined_call_operand.hbm [shape: f32[4,16,16], index: 7, kind: output, shape index: {}]  }
   0x1   :  { %14 = vsyncpa [#allocation3 + $0x1], 0  ;;  %s2974_s24 = smov 0   ;;  %s2976_s25 = smov 0  }
   0x2   :  { %s2978_s26 = smov 0   ;;  %s2980_s27 = smov 0  }
   0x3 LB: > { %s2995_s28 = sadd.s32 4294967295, %s2927_s27   ;;  %s2091_s29 = sadd.s32 4294967294, %s2927_s27   ;;  %s2927_s27 = sphi %s2980_s27, %s3583_s27   ;;  %s2923_s26 = sphi %s2978_s26, %s3582_s26   ;;  %s2919_s25 = sphi %s2976_s25, %s3581_s25   ;;  %s2915_s24 = sphi %s2974_s24, %s3580_s24  }
   0x4   : > { %s2999_s30 = sadd.s32 1, %s2927_s27   ;;  %s179_s8 = sadd.s32 1, %s2923_s26 }
   0x5   : > { %s176_s9 = ssub.s32 %s2927_s27, %s2999_s30  ;;  %p189_p0 = scmp.ne.s32.totalorder %s2923_s26, %s2919_s25 }
   0x6   : > { %p177_p1 = scmp.eq.s32.totalorder %s176_s9, 0  ;;  %p190_p2 = scmp.eq.s32.totalorder %s2995_s28, 3 }
   0x7   : > { %p195_p3 = scmp.ne.s32.totalorder %s2919_s25, %s2915_s24  ;;  %p196_p4 = scmp.eq.s32.totalorder %s2091_s29, 3 }
   0x8   : > { %s3010_s10 = scalar_select %p177_p1, %s2923_s26, %s179_s8  }
   0x9   : > { %p3012_p5 = por %p190_p2, %p189_p0  ;;  %p3016_p6 = por %p196_p4, %p195_p3 }
   0xa   : > { %p2094_p7 = scmp.ge.s32.totalorder %s2927_s27, 1  ;;  %p240_p8 = scmp.lt.s32.totalorder %s2927_s27, 5 }
   0xc   : > { %p241_p9 = pnand %p2094_p7, %p240_p8 }
   0xd   : > { %p272_p10 = scmp.lt.s32.totalorder (!%p241_p9), %s2995_s28, 3  ;;  %s269_s9 = sand.u32 (!%p241_p9), 1, %s2919_s25  }
   0xe   : > { %244 = sbr.rel (%p241_p9) target bundleno = 3568 (0xdf0), region = 48  ;;  %s2095_s13 = sshll.u32 (!%p241_p9), %s269_s9, 4 }
   0xf   : > { %s2347_s18 = sshll.u32 (!%p241_p9), %s2995_s28, 8  ;;  %s3530_s22 = scalar_lea.sflag (!%p241_p9), [#allocation3], %s269_s9 }
  0x10   : > { %s3527_s21 = scalar_lea.hbm (!%p241_p9), %s3577_s7, %s2347_s18  ;;  %s2931_s23 = smov (!%p241_p9), [#allocation2]  }
  0x11   : > { %s2871_s29 = sshll.u32 (!%p241_p9), %s2931_s23, 4  ;;  %s2872_s29 = int_to_ptr.vmem [resolvable:$false] %s2871_s29 }
  0x12   : > { %s2873_s8 = scalar_lea.vmem (!%p241_p9), %s2872_s29, 512 }
  0x13   : > { %v2746_v0 = vld [vmem:[%s3571_s1] sm:$0xff]   ;;  %v2929_v1 = vmov 0.0   ;;  %vm2930_vm0 = vmmov 0   ;;  %s273_s15 = scalar_select %p272_p10, %s2995_s28, 3  ;;  %vm289_vm1 = vcmask 130048   ;;  %v2747_v5 = vld [vmem:[%s3572_s2 + $0x8] sm:$0xff]  }
  0x14   : > { %2457 = vmatprep.subr.bf16.mxu0 %v2929_v1  ;;  %2483 = vmatprep.subr.bf16.mxu1 %v2929_v1  ;;  %v2748_v6 = vld [vmem:[%s3572_s2] sm:$0xff]   ;;  %vm334_vm2 = vcmask 261120   ;;  %v2749_v42 = vld [vmem:[%s3573_s3 + $0x18] sm:$0xff]   ;;  %v2750_v43 = vld [vmem:[%s3573_s3 + $0x10] sm:$0xff]   ;;  %vm427_vm3 = vcmask 523264  }
  0x15   : > { %2458 = vmatpush3.bf16.msra.mxu0 %v2746_v0  ;;  %2459 = vmatprep.mubr.msk.bf16.mxu0 %vm2930_vm0, %v2929_v1  ;;  %s2346_s16 = sshll.u32 %s273_s15, 4  ;;  %v2751_v44 = vld [vmem:[%s3573_s3 + $0x8] sm:$0xff]   ;;  %v2752_v45 = vld [vmem:[%s3573_s3] sm:$0xff]  }
  0x16   : > { %2463 = vmatprep.subr.bf16.mxu0 %v2929_v1  ;;  %2499 = vmatprep.mubr.msk.bf16.mxu1 %vm2930_vm0, %v2929_v1  ;;  %s276_s19 = scalar_lea.vmem %s3570_s0, %s2346_s16  ;;  %s271_s16 = scalar_lea.vmem [#allocation2], %s2095_s13 }
  0x17   : > { %v278_v2 = vld [vmem:[%s276_s19] sm:$0xff]  ;;  %v279_v3 = vld [vmem:[%s276_s19 + $0x8] sm:$0xff]  ;;  %s2029_s17 = sshll.u32 %s271_s16, 4  ;;  %s3522_s17 = int_to_ptr.vmem [resolvable:$true] %s2029_s17 }
  0x18   : > { %v282_v4 = vpack.c.bf16 %v279_v3, %v278_v2  ;;  %s2867_s28 = scalar_lea.vmem %s3522_s17, 256  ;;  %p2874_p0 = scmp.lt.s32.totalorder %s3522_s17, %s2872_s29 }
  0x19   : > { %p2868_p11 = scmp.ne.s32.totalorder %s3522_s17, %s2867_s28  ;;  %p2875_p1 = scmp.lt.s32.totalorder %s2873_s8, %s2867_s28 }
  0x1a   : > { %2460 = vmatmul.mubr.msk.bf16.vlgmr.msra.gmra.mxu0 %vm289_vm1, %v282_v4 }
  0x1b   : > { %2467 = vmatprep.mubr.msk.bf16.mxu0 %vm2930_vm0, %v2929_v1  ;;  %2464 = vmatpush3.bf16.msra.mxu0 %v2747_v5  ;;  %p2869_p12 = pnand %p2868_p11, %p3012_p5  ;;  %p2876_p2 = por %p2875_p1, %p2874_p0 }
  0x1c   : > { %2465 = vmatprep.subr.bf16.mxu0 %v2929_v1 }
  0x1d   : > { %p2870_p13 = pneg %p2869_p12 }
  0x1f   : > { %2466 = vmatpush3.bf16.msra.mxu0 %v2748_v6  ;;  %p2877_p3 = pnand %p2876_p2, %p2870_p13 }
  0x20   : > { %2471 = vmatprep.subr.bf16.mxu0 %v2929_v1 }
  0xda   : > { %v327_v7 = vpop.f32.mrf.mxu0 }
  0xdb   : > { %v335_v10 = vsel %vm334_vm2, %v327_v7, 0.0 }
  0xdc   : > { %v2461_v8 = vpop.f32.mrf.mxu0 }
  0xde   : > { %v330_v9 = vpop.f32.mrf.mxu0 }
  0xdf   : > { %v336_v11 = vsel %vm334_vm2, %v330_v9, 0.0 }
  0xe0   : > { %v337_v12 = vadd.f32 %v336_v11, %v335_v10  ;;  %v2462_v13 = vpop.f32.mrf.mxu0 }
  0xe2   : > { %v338_v14 = vrot.slane %v337_v12, 4 }
  0xe4   : > { %v339_v15 = vadd.f32 %v338_v14, %v337_v12 }
  0xe6   : > { %v340_v16 = vrot.slane %v339_v15, 2 }
  0xe8   : > { %v341_v17 = vadd.f32 %v340_v16, %v339_v15 }
  0xea   : > { %v342_v18 = vrot.slane %v341_v17, 1 }
  0xec   : > { %v343_v19 = vadd.f32 %v342_v18, %v341_v17  ;;  %v2753_v18 = vld [vmem:[%s3574_s4 + $0x38] sm:$0xff]  }
  0xed   : > { %2484 = vmatpush3.bf16.msra.mxu1 %v2753_v18 }
  0xee   : > { %v345_v20 = vmul.f32 0.0625, %v343_v19  ;;  %2485 = vmatprep.subr.bf16.mxu1 %v2929_v1  ;;  %v2754_v19 = vld [vmem:[%s3574_s4 + $0x30] sm:$0xff]  }
  0xf0   : > { %v346_v21 = vsub.f32 %v327_v7, %v345_v20  ;;  %v347_v22 = vsub.f32 %v330_v9, %v345_v20  ;;  %v2755_v20 = vld [vmem:[%s3574_s4 + $0x28] sm:$0xff]  }
  0xf1   : > { %2486 = vmatpush3.bf16.msra.mxu1 %v2754_v19 }
  0xf2   : > { %v348_v23 = vmul.f32 %v346_v21, %v346_v21  ;;  %v349_v24 = vmul.f32 %v347_v22, %v347_v22  ;;  %2487 = vmatprep.subr.bf16.mxu1 %v2929_v1 }
  0xf4   : > { %v350_v25 = vsel %vm334_vm2, %v348_v23, 0.0  ;;  %v351_v26 = vsel %vm334_vm2, %v349_v24, 0.0  ;;  %v2758_v23 = vld [vmem:[%s3574_s4 + $0x10] sm:$0xff]   ;;  %v2759_v24 = vld [vmem:[%s3574_s4 + $0x8] sm:$0xff]  }
  0xf5   : > { %v352_v27 = vadd.f32 %v351_v26, %v350_v25  ;;  %2488 = vmatpush3.bf16.msra.mxu1 %v2755_v20  ;;  %v2760_v25 = vld [vmem:[%s3574_s4] sm:$0xff]  }
  0xf6   : > { %2489 = vmatprep.subr.bf16.mxu1 %v2929_v1 }
  0xf7   : > { %v353_v28 = vrot.slane %v352_v27, 4 }
  0xf9   : > { %v354_v29 = vadd.f32 %v353_v28, %v352_v27 }
  0xfb   : > { %v355_v30 = vrot.slane %v354_v29, 2 }
  0xfd   : > { %v356_v31 = vadd.f32 %v355_v30, %v354_v29 }
  0xff   : > { %v357_v32 = vrot.slane %v356_v31, 1 }
 0x101   : > { %v358_v33 = vadd.f32 %v357_v32, %v356_v31 }
 0x103   : > { %v359_v34 = vmul.f32 0.0625, %v358_v33 }
 0x105   : > { %v360_v35 = vadd.f32 1e-05, %v359_v34 }
 0x107   : > { %2841 = vrsqrt.f32 %v360_v35 }
 0x114   : > { %v2842_v36 = vpop.eup %2841 }
 0x115   : > { %v362_v37 = vmul.f32 %v2842_v36, %v346_v21  ;;  %v363_v38 = vmul.f32 %v2842_v36, %v347_v22  ;;  %v2756_v21 = vld [vmem:[%s3574_s4 + $0x20] sm:$0xff]   ;;  %v2757_v22 = vld [vmem:[%s3574_s4 + $0x18] sm:$0xff]  }
 0x116   : > { %2490 = vmatpush3.bf16.msra.mxu1 %v2756_v21 }
 0x117   : > { %v364_v39 = vmax.f32 %v362_v37, 0.0  ;;  %v365_v40 = vmax.f32 %v363_v38, 0.0  ;;  %2491 = vmatprep.subr.bf16.mxu1 %v2929_v1 }
 0x119   : > { %v370_v41 = vpack.c.bf16 %v365_v40, %v364_v39 }
 0x11a   : > { %2492 = vmatpush3.bf16.msra.mxu1 %v2757_v22 }
 0x11b   : > { %2468 = vmatmul.mubr.msk.bf16.vlgmr.msra.gmra.mxu0 %vm334_vm2, %v370_v41  ;;  %2493 = vmatprep.subr.bf16.mxu1 %v2929_v1 }
 0x11c   : > { %2479 = vmatprep.mubr.msk.bf16.mxu0 %vm2930_vm0, %v2929_v1  ;;  %2472 = vmatpush3.bf16.msra.mxu0 %v2749_v42 }
 0x11d   : > { %2473 = vmatprep.subr.bf16.mxu0 %v2929_v1 }
 0x11e   : > { %2494 = vmatpush3.bf16.msra.mxu1 %v2758_v23 }
 0x11f   : > { %2495 = vmatprep.subr.bf16.mxu1 %v2929_v1 }
 0x120   : > { %2474 = vmatpush3.bf16.msra.mxu0 %v2750_v43 }
 0x121   : > { %2475 = vmatprep.subr.bf16.mxu0 %v2929_v1 }
 0x122   : > { %2496 = vmatpush3.bf16.msra.mxu1 %v2759_v24 }
 0x123   : > { %2497 = vmatprep.subr.bf16.mxu1 %v2929_v1 }
 0x124   : > { %2476 = vmatpush3.bf16.msra.mxu0 %v2751_v44 }
 0x125   : > { %2477 = vmatprep.subr.bf16.mxu0 %v2929_v1 }
 0x126   : > { %2498 = vmatpush3.bf16.msra.mxu1 %v2760_v25 }
 0x127   : > { %2523 = vmatprep.subr.bf16.mxu1 %v2929_v1 }
 0x128   : > { %2478 = vmatpush3.bf16.msra.mxu0 %v2752_v45 }
 0x129   : > { %2503 = vmatprep.subr.bf16.mxu0 %v2929_v1 }
 0x1db   : > { %v420_v46 = vpop.f32.mrf.mxu0 }
 0x1dc   : > { %v428_v49 = vsel %vm427_vm3, %v420_v46, 0.0 }
 0x1dd   : > { %v2469_v47 = vpop.f32.mrf.mxu0 }
 0x1df   : > { %v423_v48 = vpop.f32.mrf.mxu0 }
 0x1e0   : > { %v429_v50 = vsel %vm427_vm3, %v423_v48, 0.0 }
 0x1e1   : > { %v430_v51 = vadd.f32 %v429_v50, %v428_v49  ;;  %v2470_v52 = vpop.f32.mrf.mxu0 }
 0x1e3   : > { %v431_v53 = vrot.slane %v430_v51, 4 }
 0x1e5   : > { %v432_v54 = vadd.f32 %v431_v53, %v430_v51 }
 0x1e7   : > { %v433_v55 = vrot.slane %v432_v54, 2 }
 0x1e9   : > { %v434_v56 = vadd.f32 %v433_v55, %v432_v54 }
 0x1eb   : > { %v435_v57 = vrot.slane %v434_v56, 1 }
 0x1ed   : > { %v436_v58 = vadd.f32 %v435_v57, %v434_v56  ;;  %v2761_v57 = vld [vmem:[%s3574_s4 + $0x78] sm:$0xff]  }
 0x1ef   : > { %v437_v59 = vmul.f32 0.0625, %v436_v58  ;;  %v2762_v58 = vld [vmem:[%s3574_s4 + $0x70] sm:$0xff]  }
 0x1f1   : > { %v438_v60 = vsub.f32 %v420_v46, %v437_v59  ;;  %v439_v61 = vsub.f32 %v423_v48, %v437_v59  ;;  %v2763_v59 = vld [vmem:[%s3574_s4 + $0x68] sm:$0xff]  }
 0x1f3   : > { %v440_v62 = vmul.f32 %v438_v60, %v438_v60  ;;  %v441_v63 = vmul.f32 %v439_v61, %v439_v61 }
 0x1f5   : > { %v442_v0 = vsel %vm427_vm3, %v440_v62, 0.0  ;;  %v443_v2 = vsel %vm427_vm3, %v441_v63, 0.0  ;;  %v2766_v62 = vld [vmem:[%s3574_s4 + $0x50] sm:$0xff]   ;;  %v2767_v63 = vld [vmem:[%s3574_s4 + $0x48] sm:$0xff]  }
 0x1f6   : > { %v444_v3 = vadd.f32 %v443_v2, %v442_v0  ;;  %v2768_v0 = vld [vmem:[%s3574_s4 + $0x40] sm:$0xff]  }
 0x1f8   : > { %v445_v4 = vrot.slane %v444_v3, 4 }
 0x1fa   : > { %v446_v5 = vadd.f32 %v445_v4, %v444_v3 }
 0x1fc   : > { %v447_v6 = vrot.slane %v446_v5, 2 }
 0x1fe   : > { %v448_v7 = vadd.f32 %v447_v6, %v446_v5 }
 0x200   : > { %v449_v8 = vrot.slane %v448_v7, 1 }
 0x202   : > { %v450_v9 = vadd.f32 %v449_v8, %v448_v7 }
 0x204   : > { %v451_v10 = vmul.f32 0.0625, %v450_v9 }
 0x206   : > { %v452_v11 = vadd.f32 1e-05, %v451_v10 }
 0x208   : > { %2843 = vrsqrt.f32 %v452_v11 }
 0x215   : > { %v2844_v12 = vpop.eup %2843 }
 0x216   : > { %v454_v13 = vmul.f32 %v2844_v12, %v438_v60  ;;  %v455_v14 = vmul.f32 %v2844_v12, %v439_v61  ;;  %v2764_v60 = vld [vmem:[%s3574_s4 + $0x60] sm:$0xff]   ;;  %v2765_v61 = vld [vmem:[%s3574_s4 + $0x58] sm:$0xff]  }
 0x218   : > { %v456_v15 = vmax.f32 %v454_v13, 0.0  ;;  %v457_v16 = vmax.f32 %v455_v14, 0.0 }
 0x21a   : > { %v466_v17 = vpack.c.bf16 %v457_v16, %v456_v15 }
 0x21c   : > { %2480 = vmatmul.mubr.msk.bf16.vlgmr.msra.gmra.mxu0 %vm427_vm3, %v466_v17 }
 0x21d   : > { %2519 = vmatprep.mubr.msk.bf16.mxu0 %vm2930_vm0, %v2929_v1  ;;  %2504 = vmatpush3.bf16.msra.mxu0 %v2761_v57 }
 0x21e   : > { %2505 = vmatprep.subr.bf16.mxu0 %v2929_v1 }
 0x221   : > { %2506 = vmatpush3.bf16.msra.mxu0 %v2762_v58 }
 0x222   : > { %2507 = vmatprep.subr.bf16.mxu0 %v2929_v1 }
 0x225   : > { %2508 = vmatpush3.bf16.msra.mxu0 %v2763_v59 }
 0x226   : > { %2509 = vmatprep.subr.bf16.mxu0 %v2929_v1 }
 0x229   : > { %2510 = vmatpush3.bf16.msra.mxu0 %v2764_v60 }
 0x22a   : > { %2511 = vmatprep.subr.bf16.mxu0 %v2929_v1 }
 0x22d   : > { %2512 = vmatpush3.bf16.msra.mxu0 %v2765_v61 }
 0x22e   : > { %2513 = vmatprep.subr.bf16.mxu0 %v2929_v1 }
 0x231   : > { %2514 = vmatpush3.bf16.msra.mxu0 %v2766_v62 }
 0x232   : > { %2515 = vmatprep.subr.bf16.mxu0 %v2929_v1 }
 0x235   : > { %2516 = vmatpush3.bf16.msra.mxu0 %v2767_v63 }
 0x236   : > { %2517 = vmatprep.subr.bf16.mxu0 %v2929_v1 }
 0x239   : > { %2518 = vmatpush3.bf16.msra.mxu0 %v2768_v0 }
 0x23a   : > { %2543 = vmatprep.subr.bf16.mxu0 %v2929_v1 }
 0x2dc   : > { %v528_v26 = vpop.f32.mrf.mxu0 }
 0x2de   : > { %v2481_v27 = vpop.f32.mrf.mxu0 }
 0x2e0   : > { %v531_v28 = vpop.f32.mrf.mxu0 }
 0x2e1   : > { %v535_v29 = vadd.f32 %v531_v28, %v528_v26 }
 0x2e2   : > { %v2482_v30 = vpop.f32.mrf.mxu0 }
 0x2e3   : > { %v536_v31 = vrot.slane %v535_v29, 4 }
 0x2e5   : > { %v537_v32 = vadd.f32 %v536_v31, %v535_v29 }
 0x2e7   : > { %v538_v33 = vrot.slane %v537_v32, 2 }
 0x2e9   : > { %v539_v34 = vadd.f32 %v538_v33, %v537_v32  ;;  %v2769_v33 = vld [vmem:[%s3574_s4 + $0xb8] sm:$0xff]  }
 0x2eb   : > { %v540_v35 = vrot.slane %v539_v34, 1 }
 0x2ed   : > { %v541_v36 = vadd.f32 %v540_v35, %v539_v34  ;;  %v2770_v34 = vld [vmem:[%s3574_s4 + $0xb0] sm:$0xff]   ;;  %v2771_v35 = vld [vmem:[%s3574_s4 + $0xa8] sm:$0xff]  }
 0x2ef   : > { %v542_v37 = vmul.f32 0.0625, %v541_v36  ;;  %v2772_v36 = vld [vmem:[%s3574_s4 + $0xa0] sm:$0xff]  }
 0x2f1   : > { %v543_v38 = vsub.f32 %v528_v26, %v542_v37  ;;  %v544_v39 = vsub.f32 %v531_v28, %v542_v37  ;;  %v2773_v37 = vld [vmem:[%s3574_s4 + $0x98] sm:$0xff]  }
 0x2f3   : > { %v545_v40 = vmul.f32 %v543_v38, %v543_v38  ;;  %v546_v41 = vmul.f32 %v544_v39, %v544_v39 }
 0x2f5   : > { %v547_v42 = vadd.f32 %v546_v41, %v545_v40  ;;  %v2776_v40 = vld [vmem:[%s3574_s4 + $0x80] sm:$0xff]  }
 0x2f7   : > { %v548_v43 = vrot.slane %v547_v42, 4 }
 0x2f9   : > { %v549_v44 = vadd.f32 %v548_v43, %v547_v42 }
 0x2fb   : > { %v550_v45 = vrot.slane %v549_v44, 2 }
 0x2fd   : > { %v551_v46 = vadd.f32 %v550_v45, %v549_v44 }
 0x2ff   : > { %v552_v47 = vrot.slane %v551_v46, 1 }
 0x301   : > { %v553_v48 = vadd.f32 %v552_v47, %v551_v46 }
 0x303   : > { %v554_v49 = vmul.f32 0.0625, %v553_v48 }
 0x305   : > { %v555_v50 = vadd.f32 1e-05, %v554_v49 }
 0x307   : > { %2845 = vrsqrt.f32 %v555_v50 }
 0x314   : > { %v2846_v51 = vpop.eup %2845 }
 0x315   : > { %v3110_v52 = vmul.f32 %v2846_v51, %v544_v39  ;;  %v3112_v53 = vmul.f32 %v2846_v51, %v543_v38  ;;  %v2774_v38 = vld [vmem:[%s3574_s4 + $0x90] sm:$0xff]   ;;  %v2775_v39 = vld [vmem:[%s3574_s4 + $0x88] sm:$0xff]  }
 0x317   : > { %v560_v54 = vmax.f32 %v3110_v52, 0.0  ;;  %v559_v55 = vmax.f32 %v3112_v53, 0.0  ;;  %v2777_v53 = vld [vmem:[%s3574_s4 + $0xf8] sm:$0xff]   ;;  %v2778_v52 = vld [vmem:[%s3574_s4 + $0xf0] sm:$0xff]  }
 0x319   : > { %v577_v56 = vpack.c.bf16 %v560_v54, %v559_v55 }
 0x31b   : > { %2500 = vmatmul.mubr.bf16.vlgmr.msra.gmra.mxu1 %v577_v56 }
 0x31c   : > { %2539 = vmatprep.mubr.msk.bf16.mxu1 %vm2930_vm0, %v2929_v1  ;;  %2524 = vmatpush3.bf16.msra.mxu1 %v2769_v33 }
 0x31d   : > { %2525 = vmatprep.subr.bf16.mxu1 %v2929_v1 }
 0x320   : > { %2526 = vmatpush3.bf16.msra.mxu1 %v2770_v34 }
 0x321   : > { %2527 = vmatprep.subr.bf16.mxu1 %v2929_v1 }
 0x324   : > { %2528 = vmatpush3.bf16.msra.mxu1 %v2771_v35 }
 0x325   : > { %2529 = vmatprep.subr.bf16.mxu1 %v2929_v1 }
 0x328   : > { %2530 = vmatpush3.bf16.msra.mxu1 %v2772_v36 }
 0x329   : > { %2531 = vmatprep.subr.bf16.mxu1 %v2929_v1 }
 0x32c   : > { %2532 = vmatpush3.bf16.msra.mxu1 %v2773_v37 }
 0x32d   : > { %2533 = vmatprep.subr.bf16.mxu1 %v2929_v1 }
 0x330   : > { %2534 = vmatpush3.bf16.msra.mxu1 %v2774_v38 }
 0x331   : > { %2535 = vmatprep.subr.bf16.mxu1 %v2929_v1 }
 0x334   : > { %2536 = vmatpush3.bf16.msra.mxu1 %v2775_v39 }
 0x335   : > { %2537 = vmatprep.subr.bf16.mxu1 %v2929_v1 }
 0x338   : > { %2538 = vmatpush3.bf16.msra.mxu1 %v2776_v40 }
 0x339   : > { %2563 = vmatprep.subr.bf16.mxu1 %v2929_v1 }
 0x3db   : > { %v660_v2 = vpop.f32.mrf.mxu1 }
 0x3dd   : > { %v2501_v3 = vpop.f32.mrf.mxu1 }
 0x3df   : > { %v663_v4 = vpop.f32.mrf.mxu1 }
 0x3e0   : > { %v667_v5 = vadd.f32 %v663_v4, %v660_v2 }
 0x3e1   : > { %v2502_v6 = vpop.f32.mrf.mxu1 }
 0x3e2   : > { %v668_v7 = vrot.slane %v667_v5, 4 }
 0x3e4   : > { %v669_v8 = vadd.f32 %v668_v7, %v667_v5 }
 0x3e6   : > { %v670_v9 = vrot.slane %v669_v8, 2 }
 0x3e8   : > { %v671_v10 = vadd.f32 %v670_v9, %v669_v8 }
 0x3ea   : > { %v672_v11 = vrot.slane %v671_v10, 1 }
 0x3ec   : > { %v673_v12 = vadd.f32 %v672_v11, %v671_v10 }
 0x3ee   : > { %v674_v13 = vmul.f32 0.0625, %v673_v12 }
 0x3f0   : > { %v675_v14 = vsub.f32 %v660_v2, %v674_v13  ;;  %v676_v15 = vsub.f32 %v663_v4, %v674_v13 }
 0x3f2   : > { %v677_v16 = vmul.f32 %v675_v14, %v675_v14  ;;  %v678_v17 = vmul.f32 %v676_v15, %v676_v15 }
 0x3f4   : > { %v679_v18 = vadd.f32 %v678_v17, %v677_v16  ;;  %v2782_v16 = vld [vmem:[%s3574_s4 + $0xd0] sm:$0xff]   ;;  %v2783_v17 = vld [vmem:[%s3574_s4 + $0xc8] sm:$0xff]  }
 0x3f6   : > { %v680_v19 = vrot.slane %v679_v18, 4 }
 0x3f8   : > { %v681_v20 = vadd.f32 %v680_v19, %v679_v18  ;;  %v2784_v18 = vld [vmem:[%s3574_s4 + $0xc0] sm:$0xff]  }
 0x3fa   : > { %v682_v21 = vrot.slane %v681_v20, 2 }
 0x3fc   : > { %v683_v22 = vadd.f32 %v682_v21, %v681_v20 }
 0x3fe   : > { %v684_v23 = vrot.slane %v683_v22, 1 }
 0x400   : > { %v685_v24 = vadd.f32 %v684_v23, %v683_v22 }
 0x402   : > { %v686_v25 = vmul.f32 0.0625, %v685_v24 }
 0x404   : > { %v687_v26 = vadd.f32 1e-05, %v686_v25 }
 0x406   : > { %2847 = vrsqrt.f32 %v687_v26 }
 0x413   : > { %v2848_v27 = vpop.eup %2847 }
 0x414   : > { %v689_v28 = vmul.f32 %v2848_v27, %v675_v14  ;;  %v690_v29 = vmul.f32 %v2848_v27, %v676_v15  ;;  %v2781_v15 = vld [vmem:[%s3574_s4 + $0xd8] sm:$0xff]  }
 0x416   : > { %v691_v30 = vmax.f32 %v689_v28, 0.0  ;;  %v692_v31 = vmax.f32 %v690_v29, 0.0 }
 0x418   : > { %v710_v32 = vpack.c.bf16 %v692_v31, %v691_v30 }
 0x41a   : > { %2520 = vmatmul.mubr.bf16.vlgmr.msra.gmra.mxu0 %v710_v32 }
 0x41b   : > { %2559 = vmatprep.mubr.msk.bf16.mxu0 %vm2930_vm0, %v2929_v1  ;;  %2544 = vmatpush3.bf16.msra.mxu0 %v2777_v53 }
 0x41c   : > { %2545 = vmatprep.subr.bf16.mxu0 %v2929_v1 }
 0x41f   : > { %2546 = vmatpush3.bf16.msra.mxu0 %v2778_v52 }
 0x420   : > { %2547 = vmatprep.subr.bf16.mxu0 %v2929_v1 }
 0x4da   : > { %v793_v41 = vpop.f32.mrf.mxu0 }
 0x4dc   : > { %v2521_v42 = vpop.f32.mrf.mxu0 }
 0x4de   : > { %v796_v43 = vpop.f32.mrf.mxu0 }
 0x4df   : > { %v800_v44 = vadd.f32 %v796_v43, %v793_v41 }
 0x4e0   : > { %v2522_v45 = vpop.f32.mrf.mxu0 }
 0x4e1   : > { %v801_v46 = vrot.slane %v800_v44, 4 }
 0x4e3   : > { %v802_v47 = vadd.f32 %v801_v46, %v800_v44 }
 0x4e5   : > { %v803_v48 = vrot.slane %v802_v47, 2 }
 0x4e7   : > { %v804_v49 = vadd.f32 %v803_v48, %v802_v47 }
 0x4e9   : > { %v805_v50 = vrot.slane %v804_v49, 1 }
 0x4eb   : > { %v806_v51 = vadd.f32 %v805_v50, %v804_v49  ;;  %v2785_v50 = vld [vmem:[%s3574_s4 + $0x138] sm:$0xff]  }
 0x4ed   : > { %v807_v56 = vmul.f32 0.0625, %v806_v51  ;;  %v2786_v51 = vld [vmem:[%s3574_s4 + $0x130] sm:$0xff]  }
 0x4ef   : > { %v808_v57 = vsub.f32 %v793_v41, %v807_v56  ;;  %v809_v58 = vsub.f32 %v796_v43, %v807_v56  ;;  %v2787_v56 = vld [vmem:[%s3574_s4 + $0x128] sm:$0xff]  }
 0x4f1   : > { %v810_v59 = vmul.f32 %v808_v57, %v808_v57  ;;  %v811_v60 = vmul.f32 %v809_v58, %v809_v58 }
 0x4f3   : > { %v812_v61 = vadd.f32 %v811_v60, %v810_v59  ;;  %v2790_v59 = vld [vmem:[%s3574_s4 + $0x110] sm:$0xff]   ;;  %v2791_v60 = vld [vmem:[%s3574_s4 + $0x108] sm:$0xff]  }
 0x4f5   : > { %v813_v62 = vrot.slane %v812_v61, 4 }
 0x4f7   : > { %v814_v63 = vadd.f32 %v813_v62, %v812_v61  ;;  %v2792_v61 = vld [vmem:[%s3574_s4 + $0x100] sm:$0xff]  }
 0x4f9   : > { %v815_v0 = vrot.slane %v814_v63, 2 }
 0x4fb   : > { %v816_v2 = vadd.f32 %v815_v0, %v814_v63 }
 0x4fd   : > { %v817_v3 = vrot.slane %v816_v2, 1 }
 0x4ff   : > { %v818_v4 = vadd.f32 %v817_v3, %v816_v2 }
 0x501   : > { %v819_v5 = vmul.f32 0.0625, %v818_v4 }
 0x503   : > { %v820_v6 = vadd.f32 1e-05, %v819_v5 }
 0x505   : > { %2849 = vrsqrt.f32 %v820_v6 }
 0x512   : > { %v2850_v7 = vpop.eup %2849 }
 0x513   : > { %v822_v8 = vmul.f32 %v2850_v7, %v808_v57  ;;  %v823_v9 = vmul.f32 %v2850_v7, %v809_v58  ;;  %v2788_v57 = vld [vmem:[%s3574_s4 + $0x120] sm:$0xff]   ;;  %v2789_v58 = vld [vmem:[%s3574_s4 + $0x118] sm:$0xff]  }
 0x515   : > { %v3190_v10 = vadd.f32 %v822_v8, %v559_v55  ;;  %v3194_v11 = vadd.f32 %v823_v9, %v560_v54  ;;  %v2779_v54 = vld [vmem:[%s3574_s4 + $0xe8] sm:$0xff]   ;;  %v2780_v55 = vld [vmem:[%s3574_s4 + $0xe0] sm:$0xff]  }
 0x516   : > { %2548 = vmatpush3.bf16.msra.mxu0 %v2779_v54 }
 0x517   : > { %v827_v12 = vmax.f32 %v3194_v11, 0.0  ;;  %v826_v13 = vmax.f32 %v3190_v10, 0.0  ;;  %2549 = vmatprep.subr.bf16.mxu0 %v2929_v1  ;;  %v2793_v10 = vld [vmem:[%s3574_s4 + $0x178] sm:$0xff]   ;;  %v2794_v11 = vld [vmem:[%s3574_s4 + $0x170] sm:$0xff]  }
 0x519   : > { %v845_v14 = vpack.c.bf16 %v827_v12, %v826_v13 }
 0x51a   : > { %2550 = vmatpush3.bf16.msra.mxu0 %v2780_v55 }
 0x51b   : > { %2540 = vmatmul.mubr.bf16.vlgmr.msra.gmra.mxu1 %v845_v14  ;;  %2551 = vmatprep.subr.bf16.mxu0 %v2929_v1 }
 0x51c   : > { %2579 = vmatprep.mubr.msk.bf16.mxu1 %vm2930_vm0, %v2929_v1  ;;  %2564 = vmatpush3.bf16.msra.mxu1 %v2785_v50 }
 0x51d   : > { %2565 = vmatprep.subr.bf16.mxu1 %v2929_v1 }
 0x51e   : > { %2552 = vmatpush3.bf16.msra.mxu0 %v2781_v15 }
 0x51f   : > { %2553 = vmatprep.subr.bf16.mxu0 %v2929_v1 }
 0x520   : > { %2566 = vmatpush3.bf16.msra.mxu1 %v2786_v51 }
 0x521   : > { %2567 = vmatprep.subr.bf16.mxu1 %v2929_v1 }
 0x522   : > { %2554 = vmatpush3.bf16.msra.mxu0 %v2782_v16 }
 0x523   : > { %2555 = vmatprep.subr.bf16.mxu0 %v2929_v1 }
 0x524   : > { %2568 = vmatpush3.bf16.msra.mxu1 %v2787_v56 }
 0x525   : > { %2569 = vmatprep.subr.bf16.mxu1 %v2929_v1 }
 0x526   : > { %2556 = vmatpush3.bf16.msra.mxu0 %v2783_v17 }
 0x527   : > { %2557 = vmatprep.subr.bf16.mxu0 %v2929_v1 }
 0x528   : > { %2570 = vmatpush3.bf16.msra.mxu1 %v2788_v57 }
 0x529   : > { %2571 = vmatprep.subr.bf16.mxu1 %v2929_v1 }
 0x52a   : > { %2558 = vmatpush3.bf16.msra.mxu0 %v2784_v18 }
 0x52b   : > { %2583 = vmatprep.subr.bf16.mxu0 %v2929_v1 }
 0x52c   : > { %2572 = vmatpush3.bf16.msra.mxu1 %v2789_v58 }
 0x52d   : > { %2573 = vmatprep.subr.bf16.mxu1 %v2929_v1 }
 0x530   : > { %2574 = vmatpush3.bf16.msra.mxu1 %v2790_v59 }
 0x531   : > { %2575 = vmatprep.subr.bf16.mxu1 %v2929_v1 }
 0x534   : > { %2576 = vmatpush3.bf16.msra.mxu1 %v2791_v60 }
 0x535   : > { %2577 = vmatprep.subr.bf16.mxu1 %v2929_v1 }
 0x538   : > { %2578 = vmatpush3.bf16.msra.mxu1 %v2792_v61 }
 0x539   : > { %2603 = vmatprep.subr.bf16.mxu1 %v2929_v1 }
 0x5db   : > { %v928_v19 = vpop.f32.mrf.mxu1 }
 0x5dd   : > { %v2541_v20 = vpop.f32.mrf.mxu1 }
 0x5df   : > { %v931_v21 = vpop.f32.mrf.mxu1 }
 0x5e0   : > { %v935_v22 = vadd.f32 %v931_v21, %v928_v19 }
 0x5e1   : > { %v2542_v23 = vpop.f32.mrf.mxu1 }
 0x5e2   : > { %v936_v24 = vrot.slane %v935_v22, 4 }
 0x5e4   : > { %v937_v25 = vadd.f32 %v936_v24, %v935_v22 }
 0x5e6   : > { %v938_v26 = vrot.slane %v937_v25, 2 }
 0x5e8   : > { %v939_v27 = vadd.f32 %v938_v26, %v937_v25 }
 0x5ea   : > { %v940_v28 = vrot.slane %v939_v27, 1 }
 0x5ec   : > { %v941_v29 = vadd.f32 %v940_v28, %v939_v27 }
 0x5ee   : > { %v942_v30 = vmul.f32 0.0625, %v941_v29 }
 0x5f0   : > { %v943_v31 = vsub.f32 %v928_v19, %v942_v30  ;;  %v944_v32 = vsub.f32 %v931_v21, %v942_v30 }
 0x5f2   : > { %v945_v33 = vmul.f32 %v943_v31, %v943_v31  ;;  %v946_v34 = vmul.f32 %v944_v32, %v944_v32 }
 0x5f4   : > { %v947_v35 = vadd.f32 %v946_v34, %v945_v33  ;;  %v2798_v33 = vld [vmem:[%s3574_s4 + $0x150] sm:$0xff]   ;;  %v2799_v34 = vld [vmem:[%s3574_s4 + $0x148] sm:$0xff]  }
 0x5f6   : > { %v948_v36 = vrot.slane %v947_v35, 4 }
 0x5f8   : > { %v949_v37 = vadd.f32 %v948_v36, %v947_v35  ;;  %v2800_v35 = vld [vmem:[%s3574_s4 + $0x140] sm:$0xff]  }
 0x5fa   : > { %v950_v38 = vrot.slane %v949_v37, 2 }
 0x5fc   : > { %v951_v39 = vadd.f32 %v950_v38, %v949_v37 }
 0x5fe   : > { %v952_v40 = vrot.slane %v951_v39, 1 }
 0x600   : > { %v953_v41 = vadd.f32 %v952_v40, %v951_v39 }
 0x602   : > { %v954_v42 = vmul.f32 0.0625, %v953_v41 }
 0x604   : > { %v955_v43 = vadd.f32 1e-05, %v954_v42 }
 0x606   : > { %2851 = vrsqrt.f32 %v955_v43 }
 0x613   : > { %v2852_v44 = vpop.eup %2851 }
 0x614   : > { %v957_v45 = vmul.f32 %v2852_v44, %v943_v31  ;;  %v958_v46 = vmul.f32 %v2852_v44, %v944_v32  ;;  %v2797_v32 = vld [vmem:[%s3574_s4 + $0x158] sm:$0xff]  }
 0x616   : > { %v959_v47 = vmax.f32 %v957_v45, 0.0  ;;  %v960_v48 = vmax.f32 %v958_v46, 0.0 }
 0x618   : > { %v978_v49 = vpack.c.bf16 %v960_v48, %v959_v47 }
 0x61a   : > { %2560 = vmatmul.mubr.bf16.vlgmr.msra.gmra.mxu0 %v978_v49 }
 0x61b   : > { %2599 = vmatprep.mubr.msk.bf16.mxu0 %vm2930_vm0, %v2929_v1  ;;  %2584 = vmatpush3.bf16.msra.mxu0 %v2793_v10 }
 0x61c   : > { %2585 = vmatprep.subr.bf16.mxu0 %v2929_v1 }
 0x61f   : > { %2586 = vmatpush3.bf16.msra.mxu0 %v2794_v11 }
 0x620   : > { %2587 = vmatprep.subr.bf16.mxu0 %v2929_v1 }
 0x6da   : > { %v1061_v62 = vpop.f32.mrf.mxu0 }
 0x6dc   : > { %v2561_v63 = vpop.f32.mrf.mxu0 }
 0x6de   : > { %v1064_v0 = vpop.f32.mrf.mxu0 }
 0x6df   : > { %v1068_v2 = vadd.f32 %v1064_v0, %v1061_v62 }
 0x6e0   : > { %v2562_v3 = vpop.f32.mrf.mxu0 }
 0x6e1   : > { %v1069_v4 = vrot.slane %v1068_v2, 4 }
 0x6e3   : > { %v1070_v5 = vadd.f32 %v1069_v4, %v1068_v2 }
 0x6e5   : > { %v1071_v6 = vrot.slane %v1070_v5, 2 }
 0x6e7   : > { %v1072_v7 = vadd.f32 %v1071_v6, %v1070_v5 }
 0x6e9   : > { %v1073_v8 = vrot.slane %v1072_v7, 1 }
 0x6eb   : > { %v1074_v9 = vadd.f32 %v1073_v8, %v1072_v7  ;;  %v2801_v8 = vld [vmem:[%s3574_s4 + $0x1b8] sm:$0xff]  }
 0x6ed   : > { %v1075_v14 = vmul.f32 0.0625, %v1074_v9  ;;  %v2802_v9 = vld [vmem:[%s3574_s4 + $0x1b0] sm:$0xff]  }
 0x6ef   : > { %v1076_v53 = vsub.f32 %v1061_v62, %v1075_v14  ;;  %v1077_v52 = vsub.f32 %v1064_v0, %v1075_v14  ;;  %v2803_v14 = vld [vmem:[%s3574_s4 + $0x1a8] sm:$0xff]  }
 0x6f1   : > { %v1078_v54 = vmul.f32 %v1076_v53, %v1076_v53  ;;  %v1079_v55 = vmul.f32 %v1077_v52, %v1077_v52 }
 0x6f3   : > { %v1080_v15 = vadd.f32 %v1079_v55, %v1078_v54  ;;  %v2806_v54 = vld [vmem:[%s3574_s4 + $0x190] sm:$0xff]   ;;  %v2807_v55 = vld [vmem:[%s3574_s4 + $0x188] sm:$0xff]  }
 0x6f5   : > { %v1081_v16 = vrot.slane %v1080_v15, 4 }
 0x6f7   : > { %v1082_v17 = vadd.f32 %v1081_v16, %v1080_v15  ;;  %v2808_v15 = vld [vmem:[%s3574_s4 + $0x180] sm:$0xff]  }
 0x6f9   : > { %v1083_v18 = vrot.slane %v1082_v17, 2 }
 0x6fb   : > { %v1084_v19 = vadd.f32 %v1083_v18, %v1082_v17 }
 0x6fd   : > { %v1085_v20 = vrot.slane %v1084_v19, 1 }
 0x6ff   : > { %v1086_v21 = vadd.f32 %v1085_v20, %v1084_v19 }
 0x701   : > { %v1087_v22 = vmul.f32 0.0625, %v1086_v21 }
 0x703   : > { %v1088_v23 = vadd.f32 1e-05, %v1087_v22 }
 0x705   : > { %2853 = vrsqrt.f32 %v1088_v23 }
 0x712   : > { %v2854_v24 = vpop.eup %2853 }
 0x713   : > { %v1090_v25 = vmul.f32 %v2854_v24, %v1076_v53  ;;  %v1091_v26 = vmul.f32 %v2854_v24, %v1077_v52  ;;  %v2804_v53 = vld [vmem:[%s3574_s4 + $0x1a0] sm:$0xff]   ;;  %v2805_v52 = vld [vmem:[%s3574_s4 + $0x198] sm:$0xff]  }
 0x715   : > { %v3272_v27 = vadd.f32 %v1090_v25, %v826_v13  ;;  %v3276_v28 = vadd.f32 %v1091_v26, %v827_v12  ;;  %v2795_v12 = vld [vmem:[%s3574_s4 + $0x168] sm:$0xff]   ;;  %v2796_v13 = vld [vmem:[%s3574_s4 + $0x160] sm:$0xff]  }
 0x716   : > { %2588 = vmatpush3.bf16.msra.mxu0 %v2795_v12 }
 0x717   : > { %v1095_v29 = vmax.f32 %v3276_v28, 0.0  ;;  %v1094_v30 = vmax.f32 %v3272_v27, 0.0  ;;  %2589 = vmatprep.subr.bf16.mxu0 %v2929_v1  ;;  %v2809_v27 = vld [vmem:[%s3574_s4 + $0x1f8] sm:$0xff]   ;;  %v2810_v28 = vld [vmem:[%s3574_s4 + $0x1f0] sm:$0xff]  }
 0x719   : > { %v1113_v31 = vpack.c.bf16 %v1095_v29, %v1094_v30 }
 0x71a   : > { %2590 = vmatpush3.bf16.msra.mxu0 %v2796_v13 }
 0x71b   : > { %2580 = vmatmul.mubr.bf16.vlgmr.msra.gmra.mxu1 %v1113_v31  ;;  %2591 = vmatprep.subr.bf16.mxu0 %v2929_v1 }
 0x71c   : > { %2619 = vmatprep.mubr.msk.bf16.mxu1 %vm2930_vm0, %v2929_v1  ;;  %2604 = vmatpush3.bf16.msra.mxu1 %v2801_v8 }
 0x71d   : > { %2605 = vmatprep.subr.bf16.mxu1 %v2929_v1 }
 0x71e   : > { %2592 = vmatpush3.bf16.msra.mxu0 %v2797_v32 }
 0x71f   : > { %2593 = vmatprep.subr.bf16.mxu0 %v2929_v1 }
 0x720   : > { %2606 = vmatpush3.bf16.msra.mxu1 %v2802_v9 }
 0x721   : > { %2607 = vmatprep.subr.bf16.mxu1 %v2929_v1 }
 0x722   : > { %2594 = vmatpush3.bf16.msra.mxu0 %v2798_v33 }
 0x723   : > { %2595 = vmatprep.subr.bf16.mxu0 %v2929_v1 }
 0x724   : > { %2608 = vmatpush3.bf16.msra.mxu1 %v2803_v14 }
 0x725   : > { %2609 = vmatprep.subr.bf16.mxu1 %v2929_v1 }
 0x726   : > { %2596 = vmatpush3.bf16.msra.mxu0 %v2799_v34 }
 0x727   : > { %2597 = vmatprep.subr.bf16.mxu0 %v2929_v1 }
 0x728   : > { %2610 = vmatpush3.bf16.msra.mxu1 %v2804_v53 }
 0x729   : > { %2611 = vmatprep.subr.bf16.mxu1 %v2929_v1 }
 0x72a   : > { %2598 = vmatpush3.bf16.msra.mxu0 %v2800_v35 }
 0x72b   : > { %2623 = vmatprep.subr.bf16.mxu0 %v2929_v1 }
 0x72c   : > { %2612 = vmatpush3.bf16.msra.mxu1 %v2805_v52 }
 0x72d   : > { %2613 = vmatprep.subr.bf16.mxu1 %v2929_v1 }
 0x730   : > { %2614 = vmatpush3.bf16.msra.mxu1 %v2806_v54 }
 0x731   : > { %2615 = vmatprep.subr.bf16.mxu1 %v2929_v1 }
 0x734   : > { %2616 = vmatpush3.bf16.msra.mxu1 %v2807_v55 }
 0x735   : > { %2617 = vmatprep.subr.bf16.mxu1 %v2929_v1 }
 0x738   : > { %2618 = vmatpush3.bf16.msra.mxu1 %v2808_v15 }
 0x739   : > { %2643 = vmatprep.subr.bf16.mxu1 %v2929_v1 }
 0x7db   : > { %v1196_v36 = vpop.f32.mrf.mxu1 }
 0x7dd   : > { %v2581_v37 = vpop.f32.mrf.mxu1 }
 0x7df   : > { %v1199_v38 = vpop.f32.mrf.mxu1 }
 0x7e0   : > { %v1203_v39 = vadd.f32 %v1199_v38, %v1196_v36 }
 0x7e1   : > { %v2582_v40 = vpop.f32.mrf.mxu1 }
 0x7e2   : > { %v1204_v41 = vrot.slane %v1203_v39, 4 }
 0x7e4   : > { %v1205_v42 = vadd.f32 %v1204_v41, %v1203_v39 }
 0x7e6   : > { %v1206_v43 = vrot.slane %v1205_v42, 2 }
 0x7e8   : > { %v1207_v44 = vadd.f32 %v1206_v43, %v1205_v42 }
 0x7ea   : > { %v1208_v45 = vrot.slane %v1207_v44, 1 }
 0x7ec   : > { %v1209_v46 = vadd.f32 %v1208_v45, %v1207_v44 }
 0x7ee   : > { %v1210_v47 = vmul.f32 0.0625, %v1209_v46 }
 0x7f0   : > { %v1211_v48 = vsub.f32 %v1196_v36, %v1210_v47  ;;  %v1212_v49 = vsub.f32 %v1199_v38, %v1210_v47 }
 0x7f2   : > { %v1213_v50 = vmul.f32 %v1211_v48, %v1211_v48  ;;  %v1214_v51 = vmul.f32 %v1212_v49, %v1212_v49 }
 0x7f4   : > { %v1215_v56 = vadd.f32 %v1214_v51, %v1213_v50  ;;  %v2814_v50 = vld [vmem:[%s3574_s4 + $0x1d0] sm:$0xff]   ;;  %v2815_v51 = vld [vmem:[%s3574_s4 + $0x1c8] sm:$0xff]  }
 0x7f6   : > { %v1216_v57 = vrot.slane %v1215_v56, 4 }
 0x7f8   : > { %v1217_v58 = vadd.f32 %v1216_v57, %v1215_v56  ;;  %v2816_v56 = vld [vmem:[%s3574_s4 + $0x1c0] sm:$0xff]  }
 0x7fa   : > { %v1218_v59 = vrot.slane %v1217_v58, 2 }
 0x7fc   : > { %v1219_v60 = vadd.f32 %v1218_v59, %v1217_v58 }
 0x7fe   : > { %v1220_v61 = vrot.slane %v1219_v60, 1 }
 0x800   : > { %v1221_v62 = vadd.f32 %v1220_v61, %v1219_v60 }
 0x802   : > { %v1222_v63 = vmul.f32 0.0625, %v1221_v62 }
 0x804   : > { %v1223_v0 = vadd.f32 1e-05, %v1222_v63 }
 0x806   : > { %2855 = vrsqrt.f32 %v1223_v0 }
 0x813   : > { %v2856_v2 = vpop.eup %2855 }
 0x814   : > { %v1225_v3 = vmul.f32 %v2856_v2, %v1211_v48  ;;  %v1226_v4 = vmul.f32 %v2856_v2, %v1212_v49  ;;  %v2813_v49 = vld [vmem:[%s3574_s4 + $0x1d8] sm:$0xff]  }
 0x816   : > { %v1227_v5 = vmax.f32 %v1225_v3, 0.0  ;;  %v1228_v6 = vmax.f32 %v1226_v4, 0.0 }
 0x818   : > { %v1246_v7 = vpack.c.bf16 %v1228_v6, %v1227_v5 }
 0x81a   : > { %2600 = vmatmul.mubr.bf16.vlgmr.msra.gmra.mxu0 %v1246_v7 }
 0x81b   : > { %2639 = vmatprep.mubr.msk.bf16.mxu0 %vm2930_vm0, %v2929_v1  ;;  %2624 = vmatpush3.bf16.msra.mxu0 %v2809_v27 }
 0x81c   : > { %2625 = vmatprep.subr.bf16.mxu0 %v2929_v1 }
 0x81f   : > { %2626 = vmatpush3.bf16.msra.mxu0 %v2810_v28 }
 0x820   : > { %2627 = vmatprep.subr.bf16.mxu0 %v2929_v1 }
 0x8da   : > { %v1329_v16 = vpop.f32.mrf.mxu0 }
 0x8dc   : > { %v2601_v17 = vpop.f32.mrf.mxu0 }
 0x8de   : > { %v1332_v18 = vpop.f32.mrf.mxu0 }
 0x8df   : > { %v1336_v19 = vadd.f32 %v1332_v18, %v1329_v16 }
 0x8e0   : > { %v2602_v20 = vpop.f32.mrf.mxu0 }
 0x8e1   : > { %v1337_v21 = vrot.slane %v1336_v19, 4 }
 0x8e3   : > { %v1338_v22 = vadd.f32 %v1337_v21, %v1336_v19 }
 0x8e5   : > { %v1339_v23 = vrot.slane %v1338_v22, 2 }
 0x8e7   : > { %v1340_v24 = vadd.f32 %v1339_v23, %v1338_v22 }
 0x8e9   : > { %v1341_v25 = vrot.slane %v1340_v24, 1 }
 0x8eb   : > { %v1342_v26 = vadd.f32 %v1341_v25, %v1340_v24  ;;  %v2817_v25 = vld [vmem:[%s3574_s4 + $0x238] sm:$0xff]  }
 0x8ed   : > { %v1343_v31 = vmul.f32 0.0625, %v1342_v26  ;;  %v2818_v26 = vld [vmem:[%s3574_s4 + $0x230] sm:$0xff]  }
 0x8ef   : > { %v1344_v10 = vsub.f32 %v1329_v16, %v1343_v31  ;;  %v1345_v11 = vsub.f32 %v1332_v18, %v1343_v31  ;;  %v2819_v31 = vld [vmem:[%s3574_s4 + $0x228] sm:$0xff]  }
 0x8f1   : > { %v1346_v12 = vmul.f32 %v1344_v10, %v1344_v10  ;;  %v1347_v13 = vmul.f32 %v1345_v11, %v1345_v11 }
 0x8f3   : > { %v1348_v32 = vadd.f32 %v1347_v13, %v1346_v12  ;;  %v2822_v12 = vld [vmem:[%s3574_s4 + $0x210] sm:$0xff]   ;;  %v2823_v13 = vld [vmem:[%s3574_s4 + $0x208] sm:$0xff]  }
 0x8f5   : > { %v1349_v33 = vrot.slane %v1348_v32, 4 }
 0x8f7   : > { %v1350_v34 = vadd.f32 %v1349_v33, %v1348_v32  ;;  %v2824_v32 = vld [vmem:[%s3574_s4 + $0x200] sm:$0xff]  }
 0x8f9   : > { %v1351_v35 = vrot.slane %v1350_v34, 2 }
 0x8fb   : > { %v1352_v36 = vadd.f32 %v1351_v35, %v1350_v34 }
 0x8fd   : > { %v1353_v37 = vrot.slane %v1352_v36, 1 }
 0x8ff   : > { %v1354_v38 = vadd.f32 %v1353_v37, %v1352_v36 }
 0x901   : > { %v1355_v39 = vmul.f32 0.0625, %v1354_v38 }
 0x903   : > { %v1356_v40 = vadd.f32 1e-05, %v1355_v39 }
 0x905   : > { %2857 = vrsqrt.f32 %v1356_v40 }
 0x912   : > { %v2858_v41 = vpop.eup %2857 }
 0x913   : > { %v1358_v42 = vmul.f32 %v2858_v41, %v1344_v10  ;;  %v1359_v43 = vmul.f32 %v2858_v41, %v1345_v11  ;;  %v2820_v10 = vld [vmem:[%s3574_s4 + $0x220] sm:$0xff]   ;;  %v2821_v11 = vld [vmem:[%s3574_s4 + $0x218] sm:$0xff]  }
 0x915   : > { %v3354_v44 = vadd.f32 %v1358_v42, %v1094_v30  ;;  %v3358_v45 = vadd.f32 %v1359_v43, %v1095_v29  ;;  %v2811_v29 = vld [vmem:[%s3574_s4 + $0x1e8] sm:$0xff]   ;;  %v2812_v30 = vld [vmem:[%s3574_s4 + $0x1e0] sm:$0xff]  }
 0x916   : > { %2628 = vmatpush3.bf16.msra.mxu0 %v2811_v29 }
 0x917   : > { %v1363_v46 = vmax.f32 %v3358_v45, 0.0  ;;  %v1362_v47 = vmax.f32 %v3354_v44, 0.0  ;;  %2629 = vmatprep.subr.bf16.mxu0 %v2929_v1  ;;  %v2825_v44 = vld [vmem:[%s3574_s4 + $0x278] sm:$0xff]   ;;  %v2826_v45 = vld [vmem:[%s3574_s4 + $0x270] sm:$0xff]  }
 0x919   : > { %v1381_v48 = vpack.c.bf16 %v1363_v46, %v1362_v47 }
 0x91a   : > { %2630 = vmatpush3.bf16.msra.mxu0 %v2812_v30 }
 0x91b   : > { %2620 = vmatmul.mubr.bf16.vlgmr.msra.gmra.mxu1 %v1381_v48  ;;  %2631 = vmatprep.subr.bf16.mxu0 %v2929_v1 }
 0x91c   : > { %2659 = vmatprep.mubr.msk.bf16.mxu1 %vm2930_vm0, %v2929_v1  ;;  %2644 = vmatpush3.bf16.msra.mxu1 %v2817_v25 }
 0x91d   : > { %2645 = vmatprep.subr.bf16.mxu1 %v2929_v1 }
 0x91e   : > { %2632 = vmatpush3.bf16.msra.mxu0 %v2813_v49 }
 0x91f   : > { %2633 = vmatprep.subr.bf16.mxu0 %v2929_v1 }
 0x920   : > { %2646 = vmatpush3.bf16.msra.mxu1 %v2818_v26 }
 0x921   : > { %2647 = vmatprep.subr.bf16.mxu1 %v2929_v1 }
 0x922   : > { %2634 = vmatpush3.bf16.msra.mxu0 %v2814_v50 }
 0x923   : > { %2635 = vmatprep.subr.bf16.mxu0 %v2929_v1 }
 0x924   : > { %2648 = vmatpush3.bf16.msra.mxu1 %v2819_v31 }
 0x925   : > { %2649 = vmatprep.subr.bf16.mxu1 %v2929_v1 }
 0x926   : > { %2636 = vmatpush3.bf16.msra.mxu0 %v2815_v51 }
 0x927   : > { %2637 = vmatprep.subr.bf16.mxu0 %v2929_v1 }
 0x928   : > { %2650 = vmatpush3.bf16.msra.mxu1 %v2820_v10 }
 0x929   : > { %2651 = vmatprep.subr.bf16.mxu1 %v2929_v1 }
 0x92a   : > { %2638 = vmatpush3.bf16.msra.mxu0 %v2816_v56 }
 0x92b   : > { %2663 = vmatprep.subr.bf16.mxu0 %v2929_v1 }
 0x92c   : > { %2652 = vmatpush3.bf16.msra.mxu1 %v2821_v11 }
 0x92d   : > { %2653 = vmatprep.subr.bf16.mxu1 %v2929_v1 }
 0x930   : > { %2654 = vmatpush3.bf16.msra.mxu1 %v2822_v12 }
 0x931   : > { %2655 = vmatprep.subr.bf16.mxu1 %v2929_v1 }
 0x934   : > { %2656 = vmatpush3.bf16.msra.mxu1 %v2823_v13 }
 0x935   : > { %2657 = vmatprep.subr.bf16.mxu1 %v2929_v1 }
 0x938   : > { %2658 = vmatpush3.bf16.msra.mxu1 %v2824_v32 }
 0x939   : > { %2683 = vmatprep.subr.bf16.mxu1 %v2929_v1 }
 0x9db   : > { %v1464_v57 = vpop.f32.mrf.mxu1 }
 0x9dd   : > { %v2621_v58 = vpop.f32.mrf.mxu1 }
 0x9df   : > { %v1467_v59 = vpop.f32.mrf.mxu1 }
 0x9e0   : > { %v1471_v60 = vadd.f32 %v1467_v59, %v1464_v57 }
 0x9e1   : > { %v2622_v61 = vpop.f32.mrf.mxu1 }
 0x9e2   : > { %v1472_v62 = vrot.slane %v1471_v60, 4 }
 0x9e4   : > { %v1473_v63 = vadd.f32 %v1472_v62, %v1471_v60 }
 0x9e6   : > { %v1474_v0 = vrot.slane %v1473_v63, 2 }
 0x9e8   : > { %v1475_v2 = vadd.f32 %v1474_v0, %v1473_v63 }
 0x9ea   : > { %v1476_v3 = vrot.slane %v1475_v2, 1 }
 0x9ec   : > { %v1477_v4 = vadd.f32 %v1476_v3, %v1475_v2 }
 0x9ee   : > { %v1478_v5 = vmul.f32 0.0625, %v1477_v4 }
 0x9f0   : > { %v1479_v6 = vsub.f32 %v1464_v57, %v1478_v5  ;;  %v1480_v7 = vsub.f32 %v1467_v59, %v1478_v5 }
 0x9f2   : > { %v1481_v8 = vmul.f32 %v1479_v6, %v1479_v6  ;;  %v1482_v9 = vmul.f32 %v1480_v7, %v1480_v7 }
 0x9f4   : > { %v1483_v14 = vadd.f32 %v1482_v9, %v1481_v8  ;;  %v2830_v8 = vld [vmem:[%s3574_s4 + $0x250] sm:$0xff]   ;;  %v2831_v9 = vld [vmem:[%s3574_s4 + $0x248] sm:$0xff]  }
 0x9f6   : > { %v1484_v53 = vrot.slane %v1483_v14, 4 }
 0x9f8   : > { %v1485_v52 = vadd.f32 %v1484_v53, %v1483_v14  ;;  %v2832_v14 = vld [vmem:[%s3574_s4 + $0x240] sm:$0xff]  }
 0x9fa   : > { %v1486_v54 = vrot.slane %v1485_v52, 2 }
 0x9fc   : > { %v1487_v55 = vadd.f32 %v1486_v54, %v1485_v52 }
 0x9fe   : > { %v1488_v15 = vrot.slane %v1487_v55, 1 }
 0xa00   : > { %v1489_v16 = vadd.f32 %v1488_v15, %v1487_v55 }
 0xa02   : > { %v1490_v17 = vmul.f32 0.0625, %v1489_v16 }
 0xa04   : > { %v1491_v18 = vadd.f32 1e-05, %v1490_v17 }
 0xa06   : > { %2859 = vrsqrt.f32 %v1491_v18 }
 0xa13   : > { %v2860_v19 = vpop.eup %2859 }
 0xa14   : > { %v1493_v20 = vmul.f32 %v2860_v19, %v1479_v6  ;;  %v1494_v21 = vmul.f32 %v2860_v19, %v1480_v7  ;;  %v2829_v7 = vld [vmem:[%s3574_s4 + $0x258] sm:$0xff]  }
 0xa16   : > { %v1495_v22 = vmax.f32 %v1493_v20, 0.0  ;;  %v1496_v23 = vmax.f32 %v1494_v21, 0.0 }
 0xa18   : > { %v1514_v24 = vpack.c.bf16 %v1496_v23, %v1495_v22 }
 0xa1a   : > { %2640 = vmatmul.mubr.bf16.vlgmr.msra.gmra.mxu0 %v1514_v24 }
 0xa1b   : > { %2679 = vmatprep.mubr.msk.bf16.mxu0 %vm2930_vm0, %v2929_v1  ;;  %2664 = vmatpush3.bf16.msra.mxu0 %v2825_v44 }
 0xa1c   : > { %2665 = vmatprep.subr.bf16.mxu0 %v2929_v1 }
 0xa1f   : > { %2666 = vmatpush3.bf16.msra.mxu0 %v2826_v45 }
 0xa20   : > { %2667 = vmatprep.subr.bf16.mxu0 %v2929_v1 }
 0xada   : > { %v1597_v33 = vpop.f32.mrf.mxu0 }
 0xadc   : > { %v2641_v34 = vpop.f32.mrf.mxu0 }
 0xade   : > { %v1600_v35 = vpop.f32.mrf.mxu0 }
 0xadf   : > { %v1604_v36 = vadd.f32 %v1600_v35, %v1597_v33 }
 0xae0   : > { %v2642_v37 = vpop.f32.mrf.mxu0 }
 0xae1   : > { %v1605_v38 = vrot.slane %v1604_v36, 4 }
 0xae3   : > { %v1606_v39 = vadd.f32 %v1605_v38, %v1604_v36 }
 0xae5   : > { %v1607_v40 = vrot.slane %v1606_v39, 2 }
 0xae7   : > { %v1608_v41 = vadd.f32 %v1607_v40, %v1606_v39 }
 0xae9   : > { %v1609_v42 = vrot.slane %v1608_v41, 1 }
 0xaeb   : > { %v1610_v43 = vadd.f32 %v1609_v42, %v1608_v41  ;;  %v2833_v42 = vld [vmem:[%s3575_s5 + $0x38] sm:$0xff]  }
 0xaed   : > { %v1611_v48 = vmul.f32 0.0625, %v1610_v43  ;;  %v2834_v43 = vld [vmem:[%s3575_s5 + $0x30] sm:$0xff]  }
 0xaef   : > { %v1612_v27 = vsub.f32 %v1597_v33, %v1611_v48  ;;  %v1613_v28 = vsub.f32 %v1600_v35, %v1611_v48  ;;  %v2835_v48 = vld [vmem:[%s3575_s5 + $0x28] sm:$0xff]  }
 0xaf1   : > { %v1614_v29 = vmul.f32 %v1612_v27, %v1612_v27  ;;  %v1615_v30 = vmul.f32 %v1613_v28, %v1613_v28 }
 0xaf3   : > { %v1616_v49 = vadd.f32 %v1615_v30, %v1614_v29  ;;  %v2838_v29 = vld [vmem:[%s3575_s5 + $0x10] sm:$0xff]   ;;  %v2839_v30 = vld [vmem:[%s3575_s5 + $0x8] sm:$0xff]  }
 0xaf5   : > { %v1617_v50 = vrot.slane %v1616_v49, 4 }
 0xaf7   : > { %v1618_v51 = vadd.f32 %v1617_v50, %v1616_v49  ;;  %v2840_v49 = vld [vmem:[%s3575_s5] sm:$0xff]  }
 0xaf9   : > { %v1619_v56 = vrot.slane %v1618_v51, 2 }
 0xafb   : > { %v1620_v57 = vadd.f32 %v1619_v56, %v1618_v51 }
 0xafd   : > { %v1621_v58 = vrot.slane %v1620_v57, 1 }
 0xaff   : > { %v1622_v59 = vadd.f32 %v1621_v58, %v1620_v57 }
 0xb01   : > { %v1623_v60 = vmul.f32 0.0625, %v1622_v59 }
 0xb03   : > { %v1624_v61 = vadd.f32 1e-05, %v1623_v60 }
 0xb05   : > { %2861 = vrsqrt.f32 %v1624_v61 }
 0xb12   : > { %v2862_v62 = vpop.eup %2861 }
 0xb13   : > { %v1626_v63 = vmul.f32 %v2862_v62, %v1612_v27  ;;  %v1627_v0 = vmul.f32 %v2862_v62, %v1613_v28  ;;  %v2836_v27 = vld [vmem:[%s3575_s5 + $0x20] sm:$0xff]   ;;  %v2837_v28 = vld [vmem:[%s3575_s5 + $0x18] sm:$0xff]  }
 0xb15   : > { %v3436_v2 = vadd.f32 %v1626_v63, %v1362_v47  ;;  %v3440_v3 = vadd.f32 %v1627_v0, %v1363_v46  ;;  %v2827_v46 = vld [vmem:[%s3574_s4 + $0x268] sm:$0xff]   ;;  %v2828_v47 = vld [vmem:[%s3574_s4 + $0x260] sm:$0xff]  }
 0xb16   : > { %2668 = vmatpush3.bf16.msra.mxu0 %v2827_v46 }
 0xb17   : > { %v1631_v4 = vmax.f32 %v3440_v3, 0.0  ;;  %v1630_v5 = vmax.f32 %v3436_v2, 0.0  ;;  %2669 = vmatprep.subr.bf16.mxu0 %v2929_v1 }
 0xb19   : > { %v1649_v6 = vpack.c.bf16 %v1631_v4, %v1630_v5 }
 0xb1a   : > { %2670 = vmatpush3.bf16.msra.mxu0 %v2828_v47 }
 0xb1b   : > { %2660 = vmatmul.mubr.bf16.vlgmr.msra.gmra.mxu1 %v1649_v6  ;;  %2671 = vmatprep.subr.bf16.mxu0 %v2929_v1 }
 0xb1c   : > { %2699 = vmatprep.mubr.msk.bf16.mxu1 %vm2930_vm0, %v2929_v1  ;;  %2684 = vmatpush3.bf16.msra.mxu1 %v2833_v42 }
 0xb1d   : > { %2685 = vmatprep.subr.bf16.mxu1 %v2929_v1 }
 0xb1e   : > { %2672 = vmatpush3.bf16.msra.mxu0 %v2829_v7 }
 0xb1f   : > { %2673 = vmatprep.subr.bf16.mxu0 %v2929_v1 }
 0xb20   : > { %2686 = vmatpush3.bf16.msra.mxu1 %v2834_v43 }
 0xb21   : > { %2687 = vmatprep.subr.bf16.mxu1 %v2929_v1 }
 0xb22   : > { %2674 = vmatpush3.bf16.msra.mxu0 %v2830_v8 }
 0xb23   : > { %2675 = vmatprep.subr.bf16.mxu0 %v2929_v1 }
 0xb24   : > { %2688 = vmatpush3.bf16.msra.mxu1 %v2835_v48 }
 0xb25   : > { %2689 = vmatprep.subr.bf16.mxu1 %v2929_v1 }
 0xb26   : > { %2676 = vmatpush3.bf16.msra.mxu0 %v2831_v9 }
 0xb27   : > { %2677 = vmatprep.subr.bf16.mxu0 %v2929_v1 }
 0xb28   : > { %2690 = vmatpush3.bf16.msra.mxu1 %v2836_v27 }
 0xb29   : > { %2691 = vmatprep.subr.bf16.mxu1 %v2929_v1 }
 0xb2a   : > { %2678 = vmatpush3.bf16.msra.mxu0 %v2832_v14 }
 0xb2c   : > { %2692 = vmatpush3.bf16.msra.mxu1 %v2837_v28 }
 0xb2d   : > { %2693 = vmatprep.subr.bf16.mxu1 %v2929_v1 }
 0xb30   : > { %2694 = vmatpush3.bf16.msra.mxu1 %v2838_v29 }
 0xb31   : > { %2695 = vmatprep.subr.bf16.mxu1 %v2929_v1 }
 0xb34   : > { %2696 = vmatpush3.bf16.msra.mxu1 %v2839_v30 }
 0xb35   : > { %2697 = vmatprep.subr.bf16.mxu1 %v2929_v1 }
 0xb38   : > { %2698 = vmatpush3.bf16.msra.mxu1 %v2840_v49 }
 0xbdb   : > { %v1732_v53 = vpop.f32.mrf.mxu1 }
 0xbdd   : > { %v2661_v52 = vpop.f32.mrf.mxu1 }
 0xbdf   : > { %v1735_v54 = vpop.f32.mrf.mxu1 }
 0xbe0   : > { %v1739_v55 = vadd.f32 %v1735_v54, %v1732_v53 }
 0xbe1   : > { %v2662_v15 = vpop.f32.mrf.mxu1 }
 0xbe2   : > { %v1740_v16 = vrot.slane %v1739_v55, 4 }
 0xbe4   : > { %v1741_v17 = vadd.f32 %v1740_v16, %v1739_v55 }
 0xbe6   : > { %v1742_v18 = vrot.slane %v1741_v17, 2 }
 0xbe8   : > { %v1743_v19 = vadd.f32 %v1742_v18, %v1741_v17 }
 0xbea   : > { %v1744_v20 = vrot.slane %v1743_v19, 1 }
 0xbec   : > { %v1745_v21 = vadd.f32 %v1744_v20, %v1743_v19 }
 0xbee   : > { %v1746_v22 = vmul.f32 0.0625, %v1745_v21 }
 0xbf0   : > { %v1747_v23 = vsub.f32 %v1732_v53, %v1746_v22  ;;  %v1748_v24 = vsub.f32 %v1735_v54, %v1746_v22 }
 0xbf2   : > { %v1749_v25 = vmul.f32 %v1747_v23, %v1747_v23  ;;  %v1750_v26 = vmul.f32 %v1748_v24, %v1748_v24 }
 0xbf4   : > { %v1751_v31 = vadd.f32 %v1750_v26, %v1749_v25 }
 0xbf6   : > { %v1752_v10 = vrot.slane %v1751_v31, 4 }
 0xbf8   : > { %v1753_v11 = vadd.f32 %v1752_v10, %v1751_v31 }
 0xbfa   : > { %v1754_v12 = vrot.slane %v1753_v11, 2 }
 0xbfc   : > { %v1755_v13 = vadd.f32 %v1754_v12, %v1753_v11 }
 0xbfe   : > { %v1756_v32 = vrot.slane %v1755_v13, 1 }
 0xc00   : > { %v1757_v33 = vadd.f32 %v1756_v32, %v1755_v13 }
 0xc02   : > { %v1758_v34 = vmul.f32 0.0625, %v1757_v33 }
 0xc04   : > { %v1759_v35 = vadd.f32 1e-05, %v1758_v34 }
 0xc06   : > { %2863 = vrsqrt.f32 %v1759_v35 }
 0xc13   : > { %v2864_v36 = vpop.eup %2863 }
 0xc14   : > { %v1761_v37 = vmul.f32 %v2864_v36, %v1747_v23  ;;  %v1762_v38 = vmul.f32 %v2864_v36, %v1748_v24  ;;  %v2332_v23 = vld [vmem:[%s3576_s6] ss:$0 sm:$0xff] }
 0xc16   : > { %v1763_v39 = vmax.f32 %v1761_v37, 0.0  ;;  %v1764_v40 = vmax.f32 %v1762_v38, 0.0 }
 0xc18   : > { %v1782_v41 = vpack.c.bf16 %v1764_v40, %v1763_v39 }
 0xc1a   : > { %2680 = vmatmul.mubr.bf16.vlgmr.msra.gmra.mxu0 %v1782_v41 }
 0xcda   : > { %v1865_v50 = vpop.f32.mrf.mxu0 }
 0xcdc   : > { %v2681_v51 = vpop.f32.mrf.mxu0 }
 0xcde   : > { %v1868_v56 = vpop.f32.mrf.mxu0 }
 0xcdf   : > { %v1872_v57 = vadd.f32 %v1868_v56, %v1865_v50 }
 0xce0   : > { %v2682_v58 = vpop.f32.mrf.mxu0 }
 0xce1   : > { %v1873_v59 = vrot.slane %v1872_v57, 4 }
 0xce3   : > { %v1874_v60 = vadd.f32 %v1873_v59, %v1872_v57 }
 0xce5   : > { %v1875_v61 = vrot.slane %v1874_v60, 2 }
 0xce7   : > { %v1876_v62 = vadd.f32 %v1875_v61, %v1874_v60 }
 0xce9   : > { %v1877_v63 = vrot.slane %v1876_v62, 1 }
 0xceb   : > { %v1878_v0 = vadd.f32 %v1877_v63, %v1876_v62 }
 0xced   : > { %v1879_v6 = vmul.f32 0.0625, %v1878_v0 }
 0xcef   : > { %v1880_v44 = vsub.f32 %v1865_v50, %v1879_v6  ;;  %v1881_v45 = vsub.f32 %v1868_v56, %v1879_v6 }
 0xcf1   : > { %v1882_v1 = vmul.f32 %v1880_v44, %v1880_v44  ;;  %v1883_v46 = vmul.f32 %v1881_v45, %v1881_v45 }
 0xcf3   : > { %v1884_v47 = vadd.f32 %v1883_v46, %v1882_v1 }
 0xcf5   : > { %v1885_v7 = vrot.slane %v1884_v47, 4 }
 0xcf7   : > { %v1886_v8 = vadd.f32 %v1885_v7, %v1884_v47 }
 0xcf9   : > { %v1887_v9 = vrot.slane %v1886_v8, 2 }
 0xcfb   : > { %v1888_v14 = vadd.f32 %v1887_v9, %v1886_v8 }
 0xcfd   : > { %v1889_v53 = vrot.slane %v1888_v14, 1 }
 0xcff   : > { %v1890_v52 = vadd.f32 %v1889_v53, %v1888_v14 }
 0xd01   : > { %v1891_v54 = vmul.f32 0.0625, %v1890_v52 }
 0xd03   : > { %v1892_v55 = vadd.f32 1e-05, %v1891_v54 }
 0xd05   : > { %2865 = vrsqrt.f32 %v1892_v55 }
 0xd12   : > { %v2866_v15 = vpop.eup %2865 }
 0xd13   : > { %v1894_v16 = vmul.f32 %v2866_v15, %v1880_v44  ;;  %v1895_v17 = vmul.f32 %v2866_v15, %v1881_v45 }
 0xd15   : > { %v1896_v18 = vadd.f32 %v1894_v16, %v1630_v5  ;;  %v1897_v19 = vadd.f32 %v1895_v17, %v1631_v4 }
 0xd17   : > { %v1899_v20 = vmax.f32 %v1897_v19, 0.0  ;;  %v1898_v21 = vmax.f32 %v1896_v18, 0.0 }
 0xd19   : > { %v1916_v22 = vpack.c.bf16 %v1899_v20, %v1898_v21 }
 0xd1b   : > { %2700 = vmatmul.mubr.bf16.vlgmr.msra.gmra.mxu1 %v1916_v22 }
 0xddb   : > { %v2006_v24 = vpop.f32.mrf.mxu1 }
 0xddc   : > { %v2007_v25 = vadd.f32 %v2332_v23, %v2006_v24 }
 0xddd   : > { %v2701_v2 = vpop.f32.mrf.mxu1 }
 0xdde   : > { %2013 = vst.msk [vmem:[%s271_s16] sm:$0xff] %vm289_vm1, %v2007_v25 }
 0xddf   : > { %v2009_v3 = vpop.f32.mrf.mxu1 }
 0xde0   : > { %v2010_v4 = vadd.f32 %v2332_v23, %v2009_v3 }
 0xde1   : > { %v2702_v5 = vpop.f32.mrf.mxu1 }
 0xde2   : > { %2014 = vst.msk [vmem:[%s271_s16 + $0x8] sm:$0xff] %vm289_vm1, %v2010_v4 }
 0xde3   : > { %2880 = shalt.err (!%p2877_p3)
}
 0xde4   : > { %s2881_s9 = scalar_lea.hbm %s3527_s21, 256  ;;  %s2885_s15 = scalar_lea.hbm %s3577_s7, 1024 }
 0xde5   : > { %p2882_p4 = scmp.ne.s32.totalorder %s3527_s21, %s2881_s9  ;;  %p2886_p9 = scmp.lt.s32.totalorder %s3527_s21, %s3577_s7 }
 0xde6   : > { %p2887_p10 = scmp.lt.s32.totalorder %s2885_s15, %s2881_s9 }
 0xde7   : > { %p2883_p7 = pnand %p2882_p4, %p3012_p5 }
 0xde8   : > { %p2888_p11 = por %p2887_p10, %p2886_p9 }
 0xde9   : > { %p2884_p8 = pneg %p2883_p7 }
 0xdeb   : > { %p2889_p12 = pnand %p2888_p11, %p2884_p8 }
 0xded   : > { %2892 = shalt.err (!%p2889_p12)
}
 0xdee   : > { %s2932_s19 = smov 128   ;;  %s2933_s20 = smov 8  }
 0xdef   : > { %2703 = dma.vmem_to_hbm [thread:$0]  (%p3012_p5), %s3522_s17, 256, %s3527_s21, %s3530_s22, %s2932_s19, %s2932_s19, %s2933_s20  }
 0xdf0 PF: > { %p2709_p13 = scmp.ge.s32.totalorder %s2927_s27, 2  ;;  %s2044_s28 = sand.u32 1, %s2915_s24  }
 0xdf1   : > { %s2045_s23 = scalar_lea.sflag [#allocation3], %s2044_s28 }
 0xdf2   : > { %p2706_p0 = pnand %p2709_p13, %p3016_p6 }
 0xdf4   : > { %p2707_p1 = pneg %p2706_p0 }
 0xdf6   : > { %2910 = dma.done.wait (%p2707_p1), %s2045_s23, 256  }
 0xdf7   : > { %2912 = vsyncadd (%p2707_p1), %s2045_s23, 4294967040  ;;  %p17_p2 = scmp.ge.s32.totalorder %s2999_s30, 6   ;;  %s3580_s24 = smov %s2919_s25 }
 0xdf8   : > { %s3581_s25 = smov %s2923_s26  ;;  %s3582_s26 = smov %s3010_s10 }
 0xdf9   : > { %s3583_s27 = smov %s2999_s30  ;;  %19 = sbr.rel (!%p17_p2) target bundleno = 3 (0x3), region = 92 }
 0xdfe   :  { %2050 = vsyncpa [#allocation3], 1 }
 0xdff   :  { %2052 = vsyncpa [#allocation3 + $0x1], 1 }

</bundles_post_ra>
